<compile_context>
chip_gen: v5e
topology: v5e:2x2
jax: 0.10.0
libtpu: 0.0.40
codegen_flags: <defaults>
</compile_context>

<pallas_src>
import functools

import jax
import jax.numpy as jnp
from jax import lax
from jax.experimental import pallas as pl
from jax.experimental.pallas import tpu as pltpu

DILATIONS = (5, 7, 9, 11)
# Off-center taps of a 3x3 kernel as (row-sign, col-sign); kh = sh+1, kw = sw+1.
OFF_TAPS = ((-1, -1), (-1, 0), (-1, 1), (0, -1), (0, 1), (1, -1), (1, 0), (1, 1))


def _cdcm_kernel(w1_ref, b1_ref, wc_ref, wd_ref, mask_ref, x_ref, o_ref, *,
                 W, L, dilations):
    """One block: x_ref (Cin_p, L), o_ref (Cout_p, L); L = nb*H*W lane-dense."""
    f32 = jnp.float32
    hp = lax.Precision.HIGHEST

    y = jnp.maximum(x_ref[...], f32(0.0))                      # ReLU  (Cin_p, L)

    # ---- 1x1 conv (channel mix) on the MXU, plus bias ----
    z = jnp.dot(w1_ref[...], y, preferred_element_type=f32, precision=hp)
    z = z + b1_ref[...]                                         # (Cout_p, L)

    # ---- merged center taps of all four dilations: one small dot ----
    acc = jnp.dot(wc_ref[...], z, preferred_element_type=f32, precision=hp)

    # ---- off-center taps: per dilation, stack 8 masked/rolled planes into a
    #      (8*Cout_p, L) slab and do one MXU contraction ----
    for di, d in enumerate(dilations):
        planes = []
        for t, (sh, sw) in enumerate(OFF_TAPS):
            off = sh * d * W + sw * d                           # flat lane offset
            zs = pltpu.roll(z, shift=(-off) % L, axis=1)
            r = di * len(OFF_TAPS) + t
            planes.append(zs * mask_ref[r:r + 1, :])            # combined h*w mask
        slab = jnp.concatenate(planes, axis=0)                  # (8*Cout_p, L)
        acc = acc + jnp.dot(wd_ref[di], slab,
                            preferred_element_type=f32, precision=hp)

    o_ref[...] = acc.astype(o_ref.dtype)


def _round_up(v, m):
    return (v + m - 1) // m * m


def cdcm_forward(x, w1, b1, w2s, *, nb=None):
    """x: (N, Cin, H, W); w1: (Cout, Cin); b1: (Cout,); w2s: (4, Cout, Cout, 3, 3)."""
    N, Cin, H, W = x.shape
    nd, Cout = w2s.shape[0], w2s.shape[1]
    assert nd == len(DILATIONS)
    HW = H * W

    if nb is None:
        # Two grid steps by default (v7x megacore friendly); single-TC chips
        # pay at most one extra ~0.35us step.  Use nb=N for a grid of 1.
        nb = N // 2 if (N >= 2 and N % 2 == 0) else N
    assert N % nb == 0, "batch must divide the per-step image count"
    L = nb * HW
    assert L % 128 == 0, "lane block (nb*H*W) must be a multiple of 128"

    cin_p = _round_up(Cin, 8)
    cout_p = _round_up(Cout, 8)

    # ---- lane-dense input: batch folded onto the lane axis, channels padded ----
    xf = x.astype(jnp.float32).reshape(N, Cin, HW)
    xf = jnp.pad(xf, ((0, 0), (0, cin_p - Cin), (0, 0)))
    x_flat = xf.transpose(1, 0, 2).reshape(cin_p, N * HW)       # (Cin_p, N*HW)

    # ---- weights as small VMEM matmul tiles (channel-padded with zeros) ----
    w1_p = jnp.zeros((cout_p, cin_p), jnp.float32).at[:Cout, :Cin].set(
        w1.astype(jnp.float32))
    b1_p = jnp.zeros((cout_p, 1), jnp.float32).at[:Cout, 0].set(
        b1.astype(jnp.float32))

    w2f = w2s.astype(jnp.float32)
    # Center taps of all dilations merged into one (Cout_p, Cout_p) tile.
    wc_p = jnp.zeros((cout_p, cout_p), jnp.float32).at[:Cout, :Cout].set(
        w2f[:, :, :, 1, 1].sum(axis=0))
    # Off-center taps per dilation, laid out tap-major / channel-minor to match
    # the in-kernel slab concatenation.
    wd_rows = []
    for di in range(nd):
        taps = jnp.stack([w2f[di, :, :, sh + 1, sw + 1] for (sh, sw) in OFF_TAPS],
                         axis=0)                                # (8, Cout, Cout)
        taps = jnp.pad(taps, ((0, 0), (0, cout_p - Cout), (0, cout_p - Cout)))
        wd_rows.append(taps.transpose(1, 0, 2).reshape(cout_p, 8 * cout_p))
    wd_p = jnp.stack(wd_rows, axis=0)                           # (4, Cout_p, 8*Cout_p)

    # ---- combined boundary masks: one f32 plane per off-center tap, tiled
    #      per image inside the lane block (also kills cross-image roll wrap) ----
    hi = jnp.arange(H)
    wi = jnp.arange(W)
    mask_rows = []
    for d in DILATIONS:
        for (sh, sw) in OFF_TAPS:
            mh = (hi + sh * d >= 0) & (hi + sh * d < H)
            mw = (wi + sw * d >= 0) & (wi + sw * d < W)
            m = (mh[:, None] & mw[None, :]).astype(jnp.float32).reshape(HW)
            mask_rows.append(jnp.tile(m, nb))                   # (L,)
    masks = jnp.stack(mask_rows, axis=0)                        # (4*8, L)

    kernel = functools.partial(_cdcm_kernel, W=W, L=L, dilations=DILATIONS)

    out_flat = pl.pallas_call(
        kernel,
        out_shape=jax.ShapeDtypeStruct((cout_p, N * HW), jnp.float32),
        grid_spec=pltpu.PrefetchScalarGridSpec(
            num_scalar_prefetch=0,
            grid=(N // nb,),
            in_specs=[
                pl.BlockSpec((cout_p, cin_p), lambda n: (0, 0)),            # w1
                pl.BlockSpec((cout_p, 1), lambda n: (0, 0)),                # b1
                pl.BlockSpec((cout_p, cout_p), lambda n: (0, 0)),           # wc
                pl.BlockSpec((nd, cout_p, 8 * cout_p), lambda n: (0, 0, 0)),  # wd
                pl.BlockSpec((nd * 8, L), lambda n: (0, 0)),                # masks
                pl.BlockSpec((cin_p, L), lambda n: (0, n)),                 # x
            ],
            out_specs=pl.BlockSpec((cout_p, L), lambda n: (0, n)),
        ),
        compiler_params=pltpu.CompilerParams(
            dimension_semantics=("parallel",)),
    )(w1_p, b1_p, wc_p, wd_p, masks, x_flat)

    out = out_flat[:Cout].reshape(Cout, N, H, W).transpose(1, 0, 2, 3)
    return out.astype(x.dtype)


def cdcm_reference(x, w1, b1, w2s):
    """Pure-JAX reference mirroring the PyTorch forward (NCHW)."""
    dn = ("NCHW", "OIHW", "NCHW")
    y = jnp.maximum(x, 0.0)
    z = lax.conv_general_dilated(
        y, w1[:, :, None, None], (1, 1), "VALID",
        dimension_numbers=dn, precision=lax.Precision.HIGHEST)
    z = z + b1[None, :, None, None]
    out = None
    for i, d in enumerate(DILATIONS):
        t = lax.conv_general_dilated(
            z, w2s[i], (1, 1), ((d, d), (d, d)), rhs_dilation=(d, d),
            dimension_numbers=dn, precision=lax.Precision.HIGHEST)
        out = t if out is None else out + t
    return out


if __name__ == "__main__":
    key = jax.random.PRNGKey(0)
    kx, kw1, kb1, kw2 = jax.random.split(key, 4)

    N, Cin, Cout, H, W = 2, 4, 4, 16, 16
    x = jax.random.normal(kx, (N, Cin, H, W), dtype=jnp.float32)

    # Deterministic synthetic parameters (nonzero bias exercises the bias path).
    w1 = 0.2 * jax.random.normal(kw1, (Cout, Cin), dtype=jnp.float32)
    b1 = 0.1 * jax.random.normal(kb1, (Cout,), dtype=jnp.float32)
    w2s = 0.2 * jax.random.normal(kw2, (len(DILATIONS), Cout, Cout, 3, 3),
                                  dtype=jnp.float32)

    ref = cdcm_reference(x, w1, b1, w2s)

    # Default config: 2 grid steps (one image per lane block) -> v7x megacore.
    out = jax.block_until_ready(cdcm_forward(x, w1, b1, w2s))
    assert out.shape == ref.shape and out.dtype == ref.dtype
    err = float(jnp.max(jnp.abs(out - ref)))
    assert jnp.allclose(out, ref, atol=1e-3, rtol=1e-3), f"max abs err = {err}"

    # Single grid step with both images folded onto the lane axis: exercises
    # cross-image roll wraparound + masking (v5e / v6e preferred sizing).
    out2 = jax.block_until_ready(cdcm_forward(x, w1, b1, w2s, nb=N))
    err2 = float(jnp.max(jnp.abs(out2 - ref)))
    assert jnp.allclose(out2, ref, atol=1e-3, rtol=1e-3), f"max abs err = {err2}"

    print("KERNEL_OK")
</pallas_src>

<mosaic_0001>
module attributes {stable_mosaic.version = 11 : i64} {
  func.func @_cdcm_kernel(%arg0: i32, %arg1: memref<8x8xf32, #tpu.memory_space<vmem>>, %arg2: memref<8x1xf32, #tpu.memory_space<vmem>>, %arg3: memref<8x8xf32, #tpu.memory_space<vmem>>, %arg4: memref<4x8x64xf32, #tpu.memory_space<vmem>>, %arg5: memref<32x256xf32, #tpu.memory_space<vmem>>, %arg6: memref<8x256xf32, #tpu.memory_space<vmem>>, %arg7: memref<8x256xf32, #tpu.memory_space<vmem>>) attributes {dimension_semantics = [#tpu.dimension_semantics<parallel>], iteration_bounds = array<i64: 2>, scalar_prefetch = 0 : i64, scratch_operands = 0 : i64, tpu.core_type = #tpu.core_type<tc>, window_params = [{pipeline_mode = #tpu.pipeline_mode<synchronous>, transform_indices = @transform_0, window_bounds = array<i64: 8, 8>}, {pipeline_mode = #tpu.pipeline_mode<synchronous>, transform_indices = @transform_1, window_bounds = array<i64: 8, 1>}, {pipeline_mode = #tpu.pipeline_mode<synchronous>, transform_indices = @transform_2, window_bounds = array<i64: 8, 8>}, {pipeline_mode = #tpu.pipeline_mode<synchronous>, transform_indices = @transform_3, window_bounds = array<i64: 4, 8, 64>}, {pipeline_mode = #tpu.pipeline_mode<synchronous>, transform_indices = @transform_4, window_bounds = array<i64: 32, 256>}, {transform_indices = @transform_5, window_bounds = array<i64: 8, 256>}, {transform_indices = @transform_6, window_bounds = array<i64: 8, 256>}]} {
    %c0 = arith.constant 0 : index
    %c0_0 = arith.constant 0 : index
    %0 = vector.load %arg6[%c0, %c0_0] : memref<8x256xf32, #tpu.memory_space<vmem>>, vector<8x256xf32>
    %cst = arith.constant 0.000000e+00 : f32
    %1 = vector.broadcast %cst : f32 to vector<8x256xf32>
    %2 = arith.maximumf %0, %1 : vector<8x256xf32>
    %c0_1 = arith.constant 0 : index
    %c0_2 = arith.constant 0 : index
    %3 = vector.load %arg1[%c0_1, %c0_2] : memref<8x8xf32, #tpu.memory_space<vmem>>, vector<8x8xf32>
    %cst_3 = arith.constant dense<0.000000e+00> : vector<8x256xf32>
    %4 = tpu.matmul %3, %2, %cst_3 {dimension_numbers = #tpu.dot_dimension_numbers<[1], [0], [0], [1], [0, 0, 1, 1], [], []>, precision = #tpu.contract_precision<fp32>} : vector<8x8xf32>, vector<8x256xf32>, vector<8x256xf32> -> vector<8x256xf32>
    %c0_4 = arith.constant 0 : index
    %c0_5 = arith.constant 0 : index
    %5 = vector.load %arg2[%c0_4, %c0_5] : memref<8x1xf32, #tpu.memory_space<vmem>>, vector<8x1xf32>
    %6 = vector.broadcast %5 : vector<8x1xf32> to vector<8x256xf32>
    %7 = arith.addf %4, %6 : vector<8x256xf32>
    %c0_6 = arith.constant 0 : index
    %c0_7 = arith.constant 0 : index
    %8 = vector.load %arg3[%c0_6, %c0_7] : memref<8x8xf32, #tpu.memory_space<vmem>>, vector<8x8xf32>
    %cst_8 = arith.constant dense<0.000000e+00> : vector<8x256xf32>
    %9 = tpu.matmul %8, %7, %cst_8 {dimension_numbers = #tpu.dot_dimension_numbers<[1], [0], [0], [1], [0, 0, 1, 1], [], []>, precision = #tpu.contract_precision<fp32>} : vector<8x8xf32>, vector<8x256xf32>, vector<8x256xf32> -> vector<8x256xf32>
    %c85_i32 = arith.constant 85 : i32
    %10 = tpu.dynamic_rotate %7 by %c85_i32 dim 1 : vector<8x256xf32>, i32 -> vector<8x256xf32>
    %c0_9 = arith.constant 0 : index
    %c0_10 = arith.constant 0 : index
    %11 = vector.load %arg5[%c0_9, %c0_10] : memref<32x256xf32, #tpu.memory_space<vmem>>, vector<1x256xf32>
    %12 = vector.broadcast %11 : vector<1x256xf32> to vector<8x256xf32>
    %13 = arith.mulf %10, %12 : vector<8x256xf32>
    %c80_i32 = arith.constant 80 : i32
    %14 = tpu.dynamic_rotate %7 by %c80_i32 dim 1 : vector<8x256xf32>, i32 -> vector<8x256xf32>
    %c1 = arith.constant 1 : index
    %c0_11 = arith.constant 0 : index
    %15 = vector.load %arg5[%c1, %c0_11] : memref<32x256xf32, #tpu.memory_space<vmem>>, vector<1x256xf32>
    %16 = vector.broadcast %15 : vector<1x256xf32> to vector<8x256xf32>
    %17 = arith.mulf %14, %16 : vector<8x256xf32>
    %c75_i32 = arith.constant 75 : i32
    %18 = tpu.dynamic_rotate %7 by %c75_i32 dim 1 : vector<8x256xf32>, i32 -> vector<8x256xf32>
    %c2 = arith.constant 2 : index
    %c0_12 = arith.constant 0 : index
    %19 = vector.load %arg5[%c2, %c0_12] : memref<32x256xf32, #tpu.memory_space<vmem>>, vector<1x256xf32>
    %20 = vector.broadcast %19 : vector<1x256xf32> to vector<8x256xf32>
    %21 = arith.mulf %18, %20 : vector<8x256xf32>
    %c5_i32 = arith.constant 5 : i32
    %22 = tpu.dynamic_rotate %7 by %c5_i32 dim 1 : vector<8x256xf32>, i32 -> vector<8x256xf32>
    %c3 = arith.constant 3 : index
    %c0_13 = arith.constant 0 : index
    %23 = vector.load %arg5[%c3, %c0_13] : memref<32x256xf32, #tpu.memory_space<vmem>>, vector<1x256xf32>
    %24 = vector.broadcast %23 : vector<1x256xf32> to vector<8x256xf32>
    %25 = arith.mulf %22, %24 : vector<8x256xf32>
    %c251_i32 = arith.constant 251 : i32
    %26 = tpu.dynamic_rotate %7 by %c251_i32 dim 1 : vector<8x256xf32>, i32 -> vector<8x256xf32>
    %c4 = arith.constant 4 : index
    %c0_14 = arith.constant 0 : index
    %27 = vector.load %arg5[%c4, %c0_14] : memref<32x256xf32, #tpu.memory_space<vmem>>, vector<1x256xf32>
    %28 = vector.broadcast %27 : vector<1x256xf32> to vector<8x256xf32>
    %29 = arith.mulf %26, %28 : vector<8x256xf32>
    %c181_i32 = arith.constant 181 : i32
    %30 = tpu.dynamic_rotate %7 by %c181_i32 dim 1 : vector<8x256xf32>, i32 -> vector<8x256xf32>
    %c5 = arith.constant 5 : index
    %c0_15 = arith.constant 0 : index
    %31 = vector.load %arg5[%c5, %c0_15] : memref<32x256xf32, #tpu.memory_space<vmem>>, vector<1x256xf32>
    %32 = vector.broadcast %31 : vector<1x256xf32> to vector<8x256xf32>
    %33 = arith.mulf %30, %32 : vector<8x256xf32>
    %c176_i32 = arith.constant 176 : i32
    %34 = tpu.dynamic_rotate %7 by %c176_i32 dim 1 : vector<8x256xf32>, i32 -> vector<8x256xf32>
    %c6 = arith.constant 6 : index
    %c0_16 = arith.constant 0 : index
    %35 = vector.load %arg5[%c6, %c0_16] : memref<32x256xf32, #tpu.memory_space<vmem>>, vector<1x256xf32>
    %36 = vector.broadcast %35 : vector<1x256xf32> to vector<8x256xf32>
    %37 = arith.mulf %34, %36 : vector<8x256xf32>
    %c171_i32 = arith.constant 171 : i32
    %38 = tpu.dynamic_rotate %7 by %c171_i32 dim 1 : vector<8x256xf32>, i32 -> vector<8x256xf32>
    %c7 = arith.constant 7 : index
    %c0_17 = arith.constant 0 : index
    %39 = vector.load %arg5[%c7, %c0_17] : memref<32x256xf32, #tpu.memory_space<vmem>>, vector<1x256xf32>
    %40 = vector.broadcast %39 : vector<1x256xf32> to vector<8x256xf32>
    %41 = arith.mulf %38, %40 : vector<8x256xf32>
    %42 = tpu.concatenate %13, %17, %21, %25, %29, %33, %37, %41 in 0 : vector<8x256xf32>, vector<8x256xf32>, vector<8x256xf32>, vector<8x256xf32>, vector<8x256xf32>, vector<8x256xf32>, vector<8x256xf32>, vector<8x256xf32> -> vector<64x256xf32>
    %c0_18 = arith.constant 0 : index
    %c0_19 = arith.constant 0 : index
    %c0_20 = arith.constant 0 : index
    %43 = vector.load %arg4[%c0_18, %c0_19, %c0_20] : memref<4x8x64xf32, #tpu.memory_space<vmem>>, vector<1x8x64xf32>
    %44 = vector.shape_cast %43 : vector<1x8x64xf32> to vector<8x64xf32>
    %cst_21 = arith.constant dense<0.000000e+00> : vector<8x256xf32>
    %45 = tpu.matmul %44, %42, %cst_21 {dimension_numbers = #tpu.dot_dimension_numbers<[1], [0], [0], [1], [0, 0, 1, 1], [], []>, precision = #tpu.contract_precision<fp32>} : vector<8x64xf32>, vector<64x256xf32>, vector<8x256xf32> -> vector<8x256xf32>
    %46 = arith.addf %9, %45 : vector<8x256xf32>
    %c119_i32 = arith.constant 119 : i32
    %47 = tpu.dynamic_rotate %7 by %c119_i32 dim 1 : vector<8x256xf32>, i32 -> vector<8x256xf32>
    %c8 = arith.constant 8 : index
    %c0_22 = arith.constant 0 : index
    %48 = vector.load %arg5[%c8, %c0_22] : memref<32x256xf32, #tpu.memory_space<vmem>>, vector<1x256xf32>
    %49 = vector.broadcast %48 : vector<1x256xf32> to vector<8x256xf32>
    %50 = arith.mulf %47, %49 : vector<8x256xf32>
    %c112_i32 = arith.constant 112 : i32
    %51 = tpu.dynamic_rotate %7 by %c112_i32 dim 1 : vector<8x256xf32>, i32 -> vector<8x256xf32>
    %c9 = arith.constant 9 : index
    %c0_23 = arith.constant 0 : index
    %52 = vector.load %arg5[%c9, %c0_23] : memref<32x256xf32, #tpu.memory_space<vmem>>, vector<1x256xf32>
    %53 = vector.broadcast %52 : vector<1x256xf32> to vector<8x256xf32>
    %54 = arith.mulf %51, %53 : vector<8x256xf32>
    %c105_i32 = arith.constant 105 : i32
    %55 = tpu.dynamic_rotate %7 by %c105_i32 dim 1 : vector<8x256xf32>, i32 -> vector<8x256xf32>
    %c10 = arith.constant 10 : index
    %c0_24 = arith.constant 0 : index
    %56 = vector.load %arg5[%c10, %c0_24] : memref<32x256xf32, #tpu.memory_space<vmem>>, vector<1x256xf32>
    %57 = vector.broadcast %56 : vector<1x256xf32> to vector<8x256xf32>
    %58 = arith.mulf %55, %57 : vector<8x256xf32>
    %c7_i32 = arith.constant 7 : i32
    %59 = tpu.dynamic_rotate %7 by %c7_i32 dim 1 : vector<8x256xf32>, i32 -> vector<8x256xf32>
    %c11 = arith.constant 11 : index
    %c0_25 = arith.constant 0 : index
    %60 = vector.load %arg5[%c11, %c0_25] : memref<32x256xf32, #tpu.memory_space<vmem>>, vector<1x256xf32>
    %61 = vector.broadcast %60 : vector<1x256xf32> to vector<8x256xf32>
    %62 = arith.mulf %59, %61 : vector<8x256xf32>
    %c249_i32 = arith.constant 249 : i32
    %63 = tpu.dynamic_rotate %7 by %c249_i32 dim 1 : vector<8x256xf32>, i32 -> vector<8x256xf32>
    %c12 = arith.constant 12 : index
    %c0_26 = arith.constant 0 : index
    %64 = vector.load %arg5[%c12, %c0_26] : memref<32x256xf32, #tpu.memory_space<vmem>>, vector<1x256xf32>
    %65 = vector.broadcast %64 : vector<1x256xf32> to vector<8x256xf32>
    %66 = arith.mulf %63, %65 : vector<8x256xf32>
    %c151_i32 = arith.constant 151 : i32
    %67 = tpu.dynamic_rotate %7 by %c151_i32 dim 1 : vector<8x256xf32>, i32 -> vector<8x256xf32>
    %c13 = arith.constant 13 : index
    %c0_27 = arith.constant 0 : index
    %68 = vector.load %arg5[%c13, %c0_27] : memref<32x256xf32, #tpu.memory_space<vmem>>, vector<1x256xf32>
    %69 = vector.broadcast %68 : vector<1x256xf32> to vector<8x256xf32>
    %70 = arith.mulf %67, %69 : vector<8x256xf32>
    %c144_i32 = arith.constant 144 : i32
    %71 = tpu.dynamic_rotate %7 by %c144_i32 dim 1 : vector<8x256xf32>, i32 -> vector<8x256xf32>
    %c14 = arith.constant 14 : index
    %c0_28 = arith.constant 0 : index
    %72 = vector.load %arg5[%c14, %c0_28] : memref<32x256xf32, #tpu.memory_space<vmem>>, vector<1x256xf32>
    %73 = vector.broadcast %72 : vector<1x256xf32> to vector<8x256xf32>
    %74 = arith.mulf %71, %73 : vector<8x256xf32>
    %c137_i32 = arith.constant 137 : i32
    %75 = tpu.dynamic_rotate %7 by %c137_i32 dim 1 : vector<8x256xf32>, i32 -> vector<8x256xf32>
    %c15 = arith.constant 15 : index
    %c0_29 = arith.constant 0 : index
    %76 = vector.load %arg5[%c15, %c0_29] : memref<32x256xf32, #tpu.memory_space<vmem>>, vector<1x256xf32>
    %77 = vector.broadcast %76 : vector<1x256xf32> to vector<8x256xf32>
    %78 = arith.mulf %75, %77 : vector<8x256xf32>
    %79 = tpu.concatenate %50, %54, %58, %62, %66, %70, %74, %78 in 0 : vector<8x256xf32>, vector<8x256xf32>, vector<8x256xf32>, vector<8x256xf32>, vector<8x256xf32>, vector<8x256xf32>, vector<8x256xf32>, vector<8x256xf32> -> vector<64x256xf32>
    %c1_30 = arith.constant 1 : index
    %c0_31 = arith.constant 0 : index
    %c0_32 = arith.constant 0 : index
    %80 = vector.load %arg4[%c1_30, %c0_31, %c0_32] : memref<4x8x64xf32, #tpu.memory_space<vmem>>, vector<1x8x64xf32>
    %81 = vector.shape_cast %80 : vector<1x8x64xf32> to vector<8x64xf32>
    %cst_33 = arith.constant dense<0.000000e+00> : vector<8x256xf32>
    %82 = tpu.matmul %81, %79, %cst_33 {dimension_numbers = #tpu.dot_dimension_numbers<[1], [0], [0], [1], [0, 0, 1, 1], [], []>, precision = #tpu.contract_precision<fp32>} : vector<8x64xf32>, vector<64x256xf32>, vector<8x256xf32> -> vector<8x256xf32>
    %83 = arith.addf %46, %82 : vector<8x256xf32>
    %c153_i32 = arith.constant 153 : i32
    %84 = tpu.dynamic_rotate %7 by %c153_i32 dim 1 : vector<8x256xf32>, i32 -> vector<8x256xf32>
    %c16 = arith.constant 16 : index
    %c0_34 = arith.constant 0 : index
    %85 = vector.load %arg5[%c16, %c0_34] : memref<32x256xf32, #tpu.memory_space<vmem>>, vector<1x256xf32>
    %86 = vector.broadcast %85 : vector<1x256xf32> to vector<8x256xf32>
    %87 = arith.mulf %84, %86 : vector<8x256xf32>
    %c144_i32_35 = arith.constant 144 : i32
    %88 = tpu.dynamic_rotate %7 by %c144_i32_35 dim 1 : vector<8x256xf32>, i32 -> vector<8x256xf32>
    %c17 = arith.constant 17 : index
    %c0_36 = arith.constant 0 : index
    %89 = vector.load %arg5[%c17, %c0_36] : memref<32x256xf32, #tpu.memory_space<vmem>>, vector<1x256xf32>
    %90 = vector.broadcast %89 : vector<1x256xf32> to vector<8x256xf32>
    %91 = arith.mulf %88, %90 : vector<8x256xf32>
    %c135_i32 = arith.constant 135 : i32
    %92 = tpu.dynamic_rotate %7 by %c135_i32 dim 1 : vector<8x256xf32>, i32 -> vector<8x256xf32>
    %c18 = arith.constant 18 : index
    %c0_37 = arith.constant 0 : index
    %93 = vector.load %arg5[%c18, %c0_37] : memref<32x256xf32, #tpu.memory_space<vmem>>, vector<1x256xf32>
    %94 = vector.broadcast %93 : vector<1x256xf32> to vector<8x256xf32>
    %95 = arith.mulf %92, %94 : vector<8x256xf32>
    %c9_i32 = arith.constant 9 : i32
    %96 = tpu.dynamic_rotate %7 by %c9_i32 dim 1 : vector<8x256xf32>, i32 -> vector<8x256xf32>
    %c19 = arith.constant 19 : index
    %c0_38 = arith.constant 0 : index
    %97 = vector.load %arg5[%c19, %c0_38] : memref<32x256xf32, #tpu.memory_space<vmem>>, vector<1x256xf32>
    %98 = vector.broadcast %97 : vector<1x256xf32> to vector<8x256xf32>
    %99 = arith.mulf %96, %98 : vector<8x256xf32>
    %c247_i32 = arith.constant 247 : i32
    %100 = tpu.dynamic_rotate %7 by %c247_i32 dim 1 : vector<8x256xf32>, i32 -> vector<8x256xf32>
    %c20 = arith.constant 20 : index
    %c0_39 = arith.constant 0 : index
    %101 = vector.load %arg5[%c20, %c0_39] : memref<32x256xf32, #tpu.memory_space<vmem>>, vector<1x256xf32>
    %102 = vector.broadcast %101 : vector<1x256xf32> to vector<8x256xf32>
    %103 = arith.mulf %100, %102 : vector<8x256xf32>
    %c121_i32 = arith.constant 121 : i32
    %104 = tpu.dynamic_rotate %7 by %c121_i32 dim 1 : vector<8x256xf32>, i32 -> vector<8x256xf32>
    %c21 = arith.constant 21 : index
    %c0_40 = arith.constant 0 : index
    %105 = vector.load %arg5[%c21, %c0_40] : memref<32x256xf32, #tpu.memory_space<vmem>>, vector<1x256xf32>
    %106 = vector.broadcast %105 : vector<1x256xf32> to vector<8x256xf32>
    %107 = arith.mulf %104, %106 : vector<8x256xf32>
    %c112_i32_41 = arith.constant 112 : i32
    %108 = tpu.dynamic_rotate %7 by %c112_i32_41 dim 1 : vector<8x256xf32>, i32 -> vector<8x256xf32>
    %c22 = arith.constant 22 : index
    %c0_42 = arith.constant 0 : index
    %109 = vector.load %arg5[%c22, %c0_42] : memref<32x256xf32, #tpu.memory_space<vmem>>, vector<1x256xf32>
    %110 = vector.broadcast %109 : vector<1x256xf32> to vector<8x256xf32>
    %111 = arith.mulf %108, %110 : vector<8x256xf32>
    %c103_i32 = arith.constant 103 : i32
    %112 = tpu.dynamic_rotate %7 by %c103_i32 dim 1 : vector<8x256xf32>, i32 -> vector<8x256xf32>
    %c23 = arith.constant 23 : index
    %c0_43 = arith.constant 0 : index
    %113 = vector.load %arg5[%c23, %c0_43] : memref<32x256xf32, #tpu.memory_space<vmem>>, vector<1x256xf32>
    %114 = vector.broadcast %113 : vector<1x256xf32> to vector<8x256xf32>
    %115 = arith.mulf %112, %114 : vector<8x256xf32>
    %116 = tpu.concatenate %87, %91, %95, %99, %103, %107, %111, %115 in 0 : vector<8x256xf32>, vector<8x256xf32>, vector<8x256xf32>, vector<8x256xf32>, vector<8x256xf32>, vector<8x256xf32>, vector<8x256xf32>, vector<8x256xf32> -> vector<64x256xf32>
    %c2_44 = arith.constant 2 : index
    %c0_45 = arith.constant 0 : index
    %c0_46 = arith.constant 0 : index
    %117 = vector.load %arg4[%c2_44, %c0_45, %c0_46] : memref<4x8x64xf32, #tpu.memory_space<vmem>>, vector<1x8x64xf32>
    %118 = vector.shape_cast %117 : vector<1x8x64xf32> to vector<8x64xf32>
    %cst_47 = arith.constant dense<0.000000e+00> : vector<8x256xf32>
    %119 = tpu.matmul %118, %116, %cst_47 {dimension_numbers = #tpu.dot_dimension_numbers<[1], [0], [0], [1], [0, 0, 1, 1], [], []>, precision = #tpu.contract_precision<fp32>} : vector<8x64xf32>, vector<64x256xf32>, vector<8x256xf32> -> vector<8x256xf32>
    %120 = arith.addf %83, %119 : vector<8x256xf32>
    %c187_i32 = arith.constant 187 : i32
    %121 = tpu.dynamic_rotate %7 by %c187_i32 dim 1 : vector<8x256xf32>, i32 -> vector<8x256xf32>
    %c24 = arith.constant 24 : index
    %c0_48 = arith.constant 0 : index
    %122 = vector.load %arg5[%c24, %c0_48] : memref<32x256xf32, #tpu.memory_space<vmem>>, vector<1x256xf32>
    %123 = vector.broadcast %122 : vector<1x256xf32> to vector<8x256xf32>
    %124 = arith.mulf %121, %123 : vector<8x256xf32>
    %c176_i32_49 = arith.constant 176 : i32
    %125 = tpu.dynamic_rotate %7 by %c176_i32_49 dim 1 : vector<8x256xf32>, i32 -> vector<8x256xf32>
    %c25 = arith.constant 25 : index
    %c0_50 = arith.constant 0 : index
    %126 = vector.load %arg5[%c25, %c0_50] : memref<32x256xf32, #tpu.memory_space<vmem>>, vector<1x256xf32>
    %127 = vector.broadcast %126 : vector<1x256xf32> to vector<8x256xf32>
    %128 = arith.mulf %125, %127 : vector<8x256xf32>
    %c165_i32 = arith.constant 165 : i32
    %129 = tpu.dynamic_rotate %7 by %c165_i32 dim 1 : vector<8x256xf32>, i32 -> vector<8x256xf32>
    %c26 = arith.constant 26 : index
    %c0_51 = arith.constant 0 : index
    %130 = vector.load %arg5[%c26, %c0_51] : memref<32x256xf32, #tpu.memory_space<vmem>>, vector<1x256xf32>
    %131 = vector.broadcast %130 : vector<1x256xf32> to vector<8x256xf32>
    %132 = arith.mulf %129, %131 : vector<8x256xf32>
    %c11_i32 = arith.constant 11 : i32
    %133 = tpu.dynamic_rotate %7 by %c11_i32 dim 1 : vector<8x256xf32>, i32 -> vector<8x256xf32>
    %c27 = arith.constant 27 : index
    %c0_52 = arith.constant 0 : index
    %134 = vector.load %arg5[%c27, %c0_52] : memref<32x256xf32, #tpu.memory_space<vmem>>, vector<1x256xf32>
    %135 = vector.broadcast %134 : vector<1x256xf32> to vector<8x256xf32>
    %136 = arith.mulf %133, %135 : vector<8x256xf32>
    %c245_i32 = arith.constant 245 : i32
    %137 = tpu.dynamic_rotate %7 by %c245_i32 dim 1 : vector<8x256xf32>, i32 -> vector<8x256xf32>
    %c28 = arith.constant 28 : index
    %c0_53 = arith.constant 0 : index
    %138 = vector.load %arg5[%c28, %c0_53] : memref<32x256xf32, #tpu.memory_space<vmem>>, vector<1x256xf32>
    %139 = vector.broadcast %138 : vector<1x256xf32> to vector<8x256xf32>
    %140 = arith.mulf %137, %139 : vector<8x256xf32>
    %c91_i32 = arith.constant 91 : i32
    %141 = tpu.dynamic_rotate %7 by %c91_i32 dim 1 : vector<8x256xf32>, i32 -> vector<8x256xf32>
    %c29 = arith.constant 29 : index
    %c0_54 = arith.constant 0 : index
    %142 = vector.load %arg5[%c29, %c0_54] : memref<32x256xf32, #tpu.memory_space<vmem>>, vector<1x256xf32>
    %143 = vector.broadcast %142 : vector<1x256xf32> to vector<8x256xf32>
    %144 = arith.mulf %141, %143 : vector<8x256xf32>
    %c80_i32_55 = arith.constant 80 : i32
    %145 = tpu.dynamic_rotate %7 by %c80_i32_55 dim 1 : vector<8x256xf32>, i32 -> vector<8x256xf32>
    %c30 = arith.constant 30 : index
    %c0_56 = arith.constant 0 : index
    %146 = vector.load %arg5[%c30, %c0_56] : memref<32x256xf32, #tpu.memory_space<vmem>>, vector<1x256xf32>
    %147 = vector.broadcast %146 : vector<1x256xf32> to vector<8x256xf32>
    %148 = arith.mulf %145, %147 : vector<8x256xf32>
    %c69_i32 = arith.constant 69 : i32
    %149 = tpu.dynamic_rotate %7 by %c69_i32 dim 1 : vector<8x256xf32>, i32 -> vector<8x256xf32>
    %c31 = arith.constant 31 : index
    %c0_57 = arith.constant 0 : index
    %150 = vector.load %arg5[%c31, %c0_57] : memref<32x256xf32, #tpu.memory_space<vmem>>, vector<1x256xf32>
    %151 = vector.broadcast %150 : vector<1x256xf32> to vector<8x256xf32>
    %152 = arith.mulf %149, %151 : vector<8x256xf32>
    %153 = tpu.concatenate %124, %128, %132, %136, %140, %144, %148, %152 in 0 : vector<8x256xf32>, vector<8x256xf32>, vector<8x256xf32>, vector<8x256xf32>, vector<8x256xf32>, vector<8x256xf32>, vector<8x256xf32>, vector<8x256xf32> -> vector<64x256xf32>
    %c3_58 = arith.constant 3 : index
    %c0_59 = arith.constant 0 : index
    %c0_60 = arith.constant 0 : index
    %154 = vector.load %arg4[%c3_58, %c0_59, %c0_60] : memref<4x8x64xf32, #tpu.memory_space<vmem>>, vector<1x8x64xf32>
    %155 = vector.shape_cast %154 : vector<1x8x64xf32> to vector<8x64xf32>
    %cst_61 = arith.constant dense<0.000000e+00> : vector<8x256xf32>
    %156 = tpu.matmul %155, %153, %cst_61 {dimension_numbers = #tpu.dot_dimension_numbers<[1], [0], [0], [1], [0, 0, 1, 1], [], []>, precision = #tpu.contract_precision<fp32>} : vector<8x64xf32>, vector<64x256xf32>, vector<8x256xf32> -> vector<8x256xf32>
    %157 = arith.addf %120, %156 : vector<8x256xf32>
    %c0_62 = arith.constant 0 : index
    %c0_63 = arith.constant 0 : index
    %158 = vector.load %arg7[%c0_62, %c0_63] : memref<8x256xf32, #tpu.memory_space<vmem>>, vector<8x256xf32>
    tpu.vector_store %arg7[%c0_62, %c0_63], %157 {strides = array<i32>} : memref<8x256xf32, #tpu.memory_space<vmem>>, vector<8x256xf32>,
    return
  }
  func.func @transform_0(%arg0: i32) -> (i32, i32) {
    %c0_i32 = arith.constant 0 : i32
    %c0_i32_0 = arith.constant 0 : i32
    %c0_i32_1 = arith.constant 0 : i32
    return %c0_i32, %c0_i32_0 : i32, i32
  }
  func.func @transform_1(%arg0: i32) -> (i32, i32) {
    %c0_i32 = arith.constant 0 : i32
    %c0_i32_0 = arith.constant 0 : i32
    %c0_i32_1 = arith.constant 0 : i32
    return %c0_i32, %c0_i32_0 : i32, i32
  }
  func.func @transform_2(%arg0: i32) -> (i32, i32) {
    %c0_i32 = arith.constant 0 : i32
    %c0_i32_0 = arith.constant 0 : i32
    %c0_i32_1 = arith.constant 0 : i32
    return %c0_i32, %c0_i32_0 : i32, i32
  }
  func.func @transform_3(%arg0: i32) -> (i32, i32, i32) {
    %c0_i32 = arith.constant 0 : i32
    %c0_i32_0 = arith.constant 0 : i32
    %c0_i32_1 = arith.constant 0 : i32
    %c0_i32_2 = arith.constant 0 : i32
    return %c0_i32, %c0_i32_0, %c0_i32_1 : i32, i32, i32
  }
  func.func @transform_4(%arg0: i32) -> (i32, i32) {
    %c0_i32 = arith.constant 0 : i32
    %c0_i32_0 = arith.constant 0 : i32
    %c0_i32_1 = arith.constant 0 : i32
    return %c0_i32, %c0_i32_0 : i32, i32
  }
  func.func @transform_5(%arg0: i32) -> (i32, i32) {
    %c0_i32 = arith.constant 0 : i32
    %c0_i32_0 = arith.constant 0 : i32
    return %c0_i32, %arg0 : i32, i32
  }
  func.func @transform_6(%arg0: i32) -> (i32, i32) {
    %c0_i32 = arith.constant 0 : i32
    %c0_i32_0 = arith.constant 0 : i32
    return %c0_i32, %arg0 : i32, i32
  }
}

</mosaic_0001>

<bundles_post_ra>
// kernel: tpu_custom_call.1
= control target key start
LH: loop header
LB: loop body
LE: loop exit
PB: predicated region body
PF: predicated region fallthrough
CT: control target
= control target key end

     0   :  { %11 = vsyncpa [#allocation3], 0  ;;  %s5555_s0 = inlined_call_operand.vmem [shape: f32[8,8], index: 0, kind: input, shape index: {}]   ;;  %s5556_s1 = inlined_call_operand.vmem [shape: f32[8,1], index: 1, kind: input, shape index: {}]   ;;  %s5557_s2 = inlined_call_operand.hbm [shape: f32[8,8], index: 2, kind: input, shape index: {}]   ;;  %s5558_s3 = inlined_call_operand.hbm [shape: f32[4,8,64], index: 3, kind: input, shape index: {}]   ;;  %s5559_s4 = inlined_call_operand.hbm [shape: f32[32,256], index: 4, kind: input, shape index: {}]   ;;  %s5560_s5 = inlined_call_operand.hbm [shape: f32[8,512], index: 5, kind: input, shape index: {}]   ;;  %s5561_s6 = inlined_call_operand.hbm [shape: f32[8,512], index: 6, kind: output, shape index: {}]  }
   0x1   :  { %12 = vsyncpa [#allocation6], 0 }
   0x2   :  { %13 = vsyncpa [#allocation9], 0 }
   0x3   :  { %15 = vsyncpa [#allocation9 + $0x1], 0 }
   0x4   :  { %16 = vsyncpa [#allocation4], 0 }
   0x5   :  { %18 = vsyncpa [#allocation4 + $0x1], 0  ;;  %s3814_s21 = smov 0   ;;  %s3816_s22 = smov 0  }
   0x6   :  { %s3818_s23 = smov 0   ;;  %s3820_s24 = smov 0  }
   0x7 LB: > { %s215_s27 = sshll.u32 %s5558_s3, 4  ;;  %s3838_s28 = sadd.s32 4294967295, %s3745_s24   ;;  %s3745_s24 = sphi %s3820_s24, %s5601_s24   ;;  %s3741_s23 = sphi %s3818_s23, %s5600_s23   ;;  %s3737_s22 = sphi %s3816_s22, %s5599_s22   ;;  %s3733_s21 = sphi %s3814_s21, %s5598_s21   ;;  %s216_s27 = int_to_ptr.hbm [resolvable:$true] %s215_s27 }
   0x8   : > { %p3423_p0 = scmp.ge.s32.totalorder %s3745_s24, 1  ;;  %p150_p1 = scmp.eq.s32.totalorder %s3838_s28, 0 }
   0x9   : > { %p186_p2 = scmp.lt.s32.totalorder %s3745_s24, 3  ;;  %s3747_s30 = smov [#allocation5]  }
   0xa   : > { %s217_s7 = sshll.u32 %s3747_s30, 4  ;;  %s204_s10 = sshll.u32 %s5557_s2, 4  ;;  %s218_s7 = int_to_ptr.vmem [resolvable:$true] %s217_s7  ;;  %s205_s10 = int_to_ptr.hbm [resolvable:$true] %s204_s10 }
   0xb   : > { %p3843_p3 = pnand %p3423_p0, %p186_p2  ;;  %s229_s14 = sshll.u32 %s5559_s4, 4  ;;  %s230_s14 = int_to_ptr.hbm [resolvable:$true] %s229_s14 }
   0xc   : > { %s3748_s15 = smov [#allocation2]   ;;  %s3749_s17 = smov 128  }
   0xd   : > { %p3460_p4 = pneg %p3843_p3  ;;  %s206_s16 = sshll.u32 %s3748_s15, 4  ;;  %s207_s16 = int_to_ptr.vmem [resolvable:$true] %s206_s16 }
   0xe   : > { %s3750_s18 = smov 8   ;;  %s3751_s19 = smov [#allocation7]  }
   0xf   : > { %p3855_p6 = pnand %p3460_p4, %p150_p1  ;;  %s231_s20 = sshll.u32 %s3751_s19, 4  ;;  %s232_s20 = int_to_ptr.vmem [resolvable:$true] %s231_s20 }
  0x10   : > { %s3752_s25 = smov 256   ;;  %s3753_s26 = smov 16  }
  0x11   : > { %3466 = dma.hbm_to_vmem [thread:$0]  (!%p3855_p6), %s216_s27, 512, %s218_s7, [#allocation6], %s3749_s17, %s3749_s17, %s3750_s18  }
  0x12   : > { %3463 = dma.hbm_to_vmem [thread:$0]  (!%p3855_p6), %s205_s10, 128, %s207_s16, [#allocation3]  }
  0x13   : > { %3469 = dma.hbm_to_vmem [thread:$0]  (!%p3855_p6), %s230_s14, 1024, %s232_s20, [#allocation6], %s3752_s25, %s3752_s25, %s3753_s26  }
  0x14   : > { %s3422_s30 = sadd.s32 4294967294, %s3745_s24   ;;  %s3870_s27 = sadd.s32 1, %s3745_s24  }
  0x15   : > { %s136_s7 = sadd.s32 1, %s3741_s23  ;;  %s133_s8 = ssub.s32 %s3745_s24, %s3870_s27 }
  0x16   : > { %p143_p7 = scmp.ne.s32.totalorder %s3741_s23, %s3737_s22  ;;  %p134_p8 = scmp.eq.s32.totalorder %s133_s8, 0 }
  0x17   : > { %p144_p9 = scmp.eq.s32.totalorder %s3745_s24, 0  ;;  %p149_p10 = scmp.ne.s32.totalorder %s3737_s22, %s3733_s21 }
  0x18   : > { %p173_p11 = scmp.eq.s32.totalorder %s3838_s28, 1  ;;  %p179_p0 = scmp.eq.s32.totalorder %s3422_s30, 1 }
  0x19   : > { %s3882_s9 = scalar_select %p134_p8, %s3741_s23, %s136_s7  }
  0x1a   : > { %p3886_p12 = por %p150_p1, %p149_p10  ;;  %p3890_p13 = por %p173_p11, %p143_p7 }
  0x1b   : > { %p145_p2 = por %p144_p9, %p143_p7  ;;  %s245_s12 = sand.u32 1, %s3741_s23  }
  0x1c   : > { %p3895_p4 = por %p179_p0, %p149_p10  ;;  %p3481_p6 = scmp.lt.s32.totalorder %s3745_s24, 2 }
  0x1d   : > { %s3428_s14 = sshll.u32 %s245_s12, 4  ;;  %s3442_s15 = sshll.u32 %s3745_s24, 4 }
  0x1e   : > { %s254_s18 = scalar_lea.hbm %s5560_s5, %s3442_s15  ;;  %s249_s20 = scalar_lea.vmem [#allocation8], %s3428_s14 }
  0x1f   : > { %s256_s19 = sshll.u32 %s254_s18, 4  ;;  %s258_s25 = sshll.u32 %s249_s20, 4  ;;  %s257_s19 = int_to_ptr.hbm [resolvable:$true] %s256_s19  ;;  %s259_s25 = int_to_ptr.vmem [resolvable:$true] %s258_s25 }
  0x20   : > { %p3904_p8 = pnand %p3481_p6, %p145_p2  ;;  %s246_s30 = scalar_lea.sflag [#allocation9], %s245_s12 }
  0x21   : > { %s3641_s7 = sshra.s32 %s257_s19, 4  ;;  %s3648_s14 = scalar_lea.hbm %s5560_s5, 32  ;;  %s3642_s7 = int_to_ptr.hbm [resolvable:$true] %s3641_s7 }
  0x22   : > { %s3643_s8 = scalar_lea.hbm %s3642_s7, 16  ;;  %p3645_p9 = pneg %p3904_p8 }
  0x23   : > { %p3644_p7 = scmp.ne.s32.totalorder %s3642_s7, %s3643_s8  ;;  %p3649_p0 = scmp.lt.s32.totalorder %s3642_s7, %s5560_s5 }
  0x24   : > { %p3650_p2 = scmp.lt.s32.totalorder %s3648_s14, %s3643_s8 }
  0x25   : > { %p3646_p10 = pnand %p3645_p9, %p3644_p7 }
  0x26   : > { %p3651_p6 = por %p3650_p2, %p3649_p0 }
  0x27   : > { %p3647_p11 = pneg %p3646_p10 }
  0x29   : > { %p3652_p5 = pnand %p3651_p6, %p3647_p11 }
  0x2b   : > { %3655 = shalt.err (!%p3652_p5)
}
  0x2c   : > { %3473 = dma.hbm_to_vmem [thread:$0]  (!%p3904_p8), %s257_s19, 256, %s259_s25, %s246_s30  }
  0x2d   : > { %267 = sbr.rel (%p3843_p3) target bundleno = 728 (0x2d8), region = 44 }
  0x32   : > { %3716 = dma.done.wait (%p150_p1), [#allocation3], 128  }
  0x33   : > { %3718 = vsyncadd (%p150_p1), [#allocation3], 4294967168 }
  0x34   : > { %3720 = dma.done.wait (%p150_p1), [#allocation6], 1536  }
  0x35   : > { %3722 = vsyncadd (%p150_p1), [#allocation6], 4294965760  ;;  %s3929_s12 = sand.u32 1, %s3737_s22  }
  0x36   : > { %s3435_s29 = sshll.u32 %s3929_s12, 4  ;;  %s285_s19 = scalar_lea.sflag [#allocation9], %s3929_s12 }
  0x37   : > { %s288_s20 = scalar_lea.vmem [#allocation8], %s3435_s29 }
  0x38   : > { %3724 = dma.done.wait (%p3886_p12), %s285_s19, 256  }
  0x39   : > { %3726 = vsyncadd (%p3886_p12), %s285_s19, 4294967040  ;;  %v3754_v0 = vmov 0   ;;  %vm331_vm0 = vcmask 64512   ;;  %v320_v1 = vld [vmem:[%s288_s20] sm:$0xff]  ;;  %v324_v2 = vld [vmem:[%s5555_s0] sm:$0xff]  ;;  %s3755_s10 = smov 53   ;;  %v632_v51 = vlaneseq }
  0x3a   : > { %3550 = vset.pattern.permute.xlu0 %v3754_v0  ;;  %v322_v3 = vmax.f32 %v320_v1, 0.0  ;;  %v333_v4 = vsel %vm331_vm0, %v324_v2, 0  ;;  %v321_v5 = vld [vmem:[%s288_s20 + $0x8] sm:$0xff]  ;;  %s3756_s8 = smov 48   ;;  %s3757_s15 = smov 43   ;;  %vm758_vm9 = vcmask 523264  }
  0x3b   : > { %v325_v6 = vld [vmem:[%s5556_s1] sm:$0xff]  ;;  %v352_v7 = vand.u32 4294901760, %v333_v4  ;;  %v323_v8 = vmax.f32 %v321_v5, 0.0  ;;  %s3758_s16 = smov 75   ;;  %s3759_s14 = smov 123   ;;  %v3999_v54 = vand.u32 127, %v632_v51 }
  0x3c   : > { %328 = vperm.xlu0 %3550, %v325_v6   ;;  %v350_v9 = vand.u32 4294901760, %v322_v3  ;;  %s3760_s17 = smov 5   ;;  %s3761_s18 = smov 80   ;;  %v733_v55 = vld [vmem:[#allocation7 + $0x6] ss:$8 sm:$0x3] }
  0x3d   : > { %v353_v10 = vsub.f32 %v333_v4, %v352_v7  ;;  %v496_v11 = vand.u32 4294901760, %v323_v8  ;;  %s3762_s19 = smov 85   ;;  %s3763_s20 = smov 9   ;;  %vm729_vm1 = vcmp.lt.s32.totalorder %v3999_v54, 48  ;;  %v735_v58 = vperm.slane %v733_v55, 0 }
  0x3e   : > { %v377_v12 = vsub.f32 %v322_v3, %v350_v9  ;;  %427 = vmatpush.msra.mxu3 %v350_v9  ;;  %351 = vmatpush.msra.mxu0 %v350_v9  ;;  %s3764_s25 = smov 23   ;;  %s3765_s26 = smov 121   ;;  %v701_v60 = vld [vmem:[#allocation7 + $0x4] ss:$8 sm:$0x3]  ;;  %vm697_vm2 = vcmp.lt.s32.totalorder %v3999_v54, 123 }
  0x3f   : > { %v354_v13 = vand.u32 4294901760, %v353_v10  ;;  %v523_v14 = vsub.f32 %v323_v8, %v496_v11  ;;  %s3766_s30 = smov 16   ;;  %s3767_s7 = smov 105   ;;  %v4010_v61 = vld [vmem:[#allocation7 + $0x5] ss:$8 sm:$0x3] }
  0x40   : > { %404 = vmatpush.msra.mxu2 %v377_v12  ;;  %v378_v15 = vand.u32 4294901760, %v377_v12  ;;  %v736_v63 = vperm.slane %v733_v55, 1  ;;  %v703_v2 = vperm.slane %v701_v60, 0  ;;  %vm713_vm3 = vcmp.lt.s32.totalorder %v3999_v54, 53 }
  0x41   : > { %407 = vmatmul.f32.vlgmr.msra.gmra.mxu2 %v353_v10  ;;  %431 = vmatmul.f32.vlgmr.msra.gmra.mxu3 %v354_v13  ;;  %v355_v16 = vsub.f32 %v353_v10, %v354_v13  ;;  %v524_v17 = vand.u32 4294901760, %v523_v14  ;;  %v719_v5 = vperm.slane %v4010_v61, 0  ;;  %vm649_vm4 = vcmp.lt.s32.totalorder %v3999_v54, 80 }
  0x42   : > { %v379_v18 = vsub.f32 %v377_v12, %v378_v15  ;;  %497 = vmatpush.msrb.mxu2 %v496_v11  ;;  %453 = vmatpush.msrb.mxu0 %v378_v15  ;;  %vm745_vm5 = vcmp.lt.s32.totalorder %v3999_v54, 43  ;;  %vm665_vm6 = vcmp.lt.s32.totalorder %v3999_v54, 75  ;;  %vm681_vm7 = vcmp.lt.s32.totalorder %v3999_v54, 5 }
  0x43   : > { %v356_v19 = vand.u32 4294901760, %v355_v16  ;;  %v525_v20 = vsub.f32 %v523_v14, %v524_v17  ;;  %vm634_vm8 = vcmp.lt.s32.totalorder %v3999_v54, 85  ;;  %vm1647_vm10 = vcmp.lt.s32.totalorder %v3999_v54, 9 }
  0x44   : > { %599 = vmatpush.msra.mxu2 %v524_v17  ;;  %v380_v21 = vand.u32 4294901760, %v379_v18  ;;  %vm1631_vm11 = vcmp.lt.s32.totalorder %v3999_v54, 16  ;;  %vm1615_vm12 = vcmp.lt.s32.totalorder %v3999_v54, 23  ;;  %vm1599_vm13 = vcmp.lt.s32.totalorder %v3999_v54, 121 }
  0x45   : > { %357 = vmatmul.f32.vlgmr.msra.gmra.mxu0 %v356_v19  ;;  %v526_v22 = vand.u32 4294901760, %v525_v20  ;;  %vm1583_vm14 = vcmp.lt.s32.totalorder %v3999_v54, 7  ;;  %vm1567_vm15 = vcmp.lt.s32.totalorder %v3999_v54, 105 }
  0x46   : > { %381 = vmatpush.msra.mxu1 %v380_v21  ;;  %550 = vmatpush.msra.mxu0 %v523_v14  ;;  %v704_v14 = vperm.slane %v701_v60, 1 }
  0x47   : > { %383 = vmatmul.f32.vlgmr.msra.gmra.mxu1 %v352_v7  ;;  %527 = vmatpush.msrb.mxu3 %v526_v22 }
  0x48   : > { %475 = vmatpush.msrb.mxu1 %v350_v9 }
  0x49   : > { %621 = vmatpush.msra.mxu3 %v496_v11  ;;  %503 = vmatmul.f32.vlgmr.msrb.gmra.mxu2 %v356_v19 }
  0x4a   : > { %529 = vmatmul.f32.vlgmr.msrb.gmra.mxu3 %v352_v7  ;;  %573 = vmatpush.msra.mxu1 %v496_v11  ;;  %v749_v11 = vld [vmem:[#allocation7 + $0x7] ss:$8 sm:$0x3] }
  0x4b   : > { %v751_v17 = vperm.slane %v749_v11, 0  ;;  %v752_v18 = vperm.slane %v749_v11, 1 }
  0x4d   : > { %455 = vmatmul.f32.vlgmr.msrb.gmra.mxu0 %v352_v7 }
  0x4f   : > { %477 = vmatmul.f32.vlgmr.msrb.gmra.mxu1 %v352_v7 }
  0x51   : > { %601 = vmatmul.f32.vlgmr.msra.gmra.mxu2 %v352_v7 }
  0x52   : > { %623 = vmatmul.f32.vlgmr.msra.gmra.mxu3 %v352_v7  ;;  %v4021_v7 = vld [vmem:[#allocation7 + $0x1] ss:$8 sm:$0x3] }
  0x53   : > { %v655_v16 = vperm.slane %v4021_v7, 0 }
  0x55   : > { %553 = vmatmul.f32.vlgmr.msra.gmra.mxu0 %v353_v10 }
  0x57   : > { %577 = vmatmul.f32.vlgmr.msra.gmra.mxu1 %v354_v13  ;;  %v4029_v13 = vld [vmem:[#allocation7 + $0x2] ss:$8 sm:$0x3] }
  0x58   : > { %v671_v20 = vperm.slane %v4029_v13, 0 }
  0xae   : > { %v329_v23 = vpop.permute.xlu0 %328 }
  0xc2   : > { %v358_v24 = vpop.f32.mrf.mxu0 }
  0xc3   : > { %v359_v25 = vadd.f32 %v358_v24, %v329_v23  ;;  %v656_v24 = vperm.slane %v4021_v7, 1 }
  0xc4   : > { %v384_v26 = vpop.f32.mrf.mxu1  ;;  %v408_v27 = vpop.f32.mrf.mxu2 }
  0xc5   : > { %v385_v28 = vadd.f32 %v384_v26, %v359_v25  ;;  %v432_v29 = vpop.f32.mrf.mxu3 }
  0xc7   : > { %v409_v30 = vadd.f32 %v408_v27, %v385_v28  ;;  %v720_v28 = vperm.slane %v4010_v61, 1 }
  0xc9   : > { %v433_v31 = vadd.f32 %v432_v29, %v409_v30 }
  0xca   : > { %v456_v32 = vpop.f32.mrf.mxu0 }
  0xcb   : > { %v457_v33 = vadd.f32 %v456_v32, %v433_v31  ;;  %v672_v31 = vperm.slane %v4029_v13, 1 }
  0xcc   : > { %v478_v34 = vpop.f32.mrf.mxu1  ;;  %v504_v35 = vpop.f32.mrf.mxu2 }
  0xcd   : > { %v3946_v36 = vadd.f32 %v478_v34, %v457_v33  ;;  %v505_v37 = vadd.f32 %v504_v35, %v329_v23  ;;  %v530_v38 = vpop.f32.mrf.mxu3 }
  0xcf   : > { %709 = vrot.lane.b32.xlu2 %v3946_v36, %s3755_s10  ;;  %725 = vrot.lane.b32.xlu1 %v3946_v36, %s3756_s8  ;;  %v531_v39 = vadd.f32 %v530_v38, %v505_v37  ;;  %v685_v38 = vld [vmem:[#allocation7 + $0x3] ss:$8 sm:$0x3] }
  0xd0   : > { %741 = vrot.lane.b32.xlu0 %v3946_v36, %s3757_s15 }
  0xd2   : > { %v554_v40 = vpop.f32.mrf.mxu0 }
  0xd3   : > { %v555_v41 = vadd.f32 %v554_v40, %v531_v39 }
  0xd4   : > { %v578_v42 = vpop.f32.mrf.mxu1  ;;  %v602_v44 = vpop.f32.mrf.mxu2 }
  0xd5   : > { %v579_v43 = vadd.f32 %v578_v42, %v555_v41  ;;  %v624_v46 = vpop.f32.mrf.mxu3 }
  0xd7   : > { %661 = vrot.lane.b32.xlu2 %v3946_v36, %s3758_s16  ;;  %693 = vrot.lane.b32.xlu1 %v3946_v36, %s3759_s14  ;;  %v603_v45 = vadd.f32 %v602_v44, %v579_v43 }
  0xd8   : > { %677 = vrot.lane.b32.xlu0 %v3946_v36, %s3760_s17 }
  0xd9   : > { %v3954_v47 = vadd.f32 %v624_v46, %v603_v45 }
  0xdf   : > { %727 = vrot.lane.b32.xlu2 %v3954_v47, %s3756_s8  ;;  %645 = vrot.lane.b32.xlu1 %v3946_v36, %s3761_s18  ;;  %s3769_s8 = smov 7  }
  0xe0   : > { %711 = vrot.lane.b32.xlu0 %v3954_v47, %s3755_s10  ;;  %s3768_s10 = smov 112  }
  0xe7   : > { %695 = vrot.lane.b32.xlu2 %v3954_v47, %s3759_s14  ;;  %743 = vrot.lane.b32.xlu1 %v3954_v47, %s3757_s15  ;;  %s3770_s15 = smov 119   ;;  %s3772_s14 = smov 25  }
  0xe8   : > { %663 = vrot.lane.b32.xlu0 %v3954_v47, %s3758_s16  ;;  %s3771_s16 = smov 103  }
  0xef   : > { %647 = vrot.lane.b32.xlu2 %v3954_v47, %s3761_s18  ;;  %679 = vrot.lane.b32.xlu1 %v3954_v47, %s3760_s17  ;;  %s3773_s17 = smov 91   ;;  %s3774_s18 = smov 117  }
  0xf0   : > { %628 = vrot.lane.b32.xlu0 %v3946_v36, %s3762_s19 }
  0xf7   : > { %1643 = vrot.lane.b32.xlu2 %v3946_v36, %s3763_s20  ;;  %630 = vrot.lane.b32.xlu1 %v3954_v47, %s3762_s19  ;;  %s3775_s19 = smov 69  }
  0xf8   : > { %1611 = vrot.lane.b32.xlu0 %v3946_v36, %s3764_s25 }
  0xff   : > { %1595 = vrot.lane.b32.xlu2 %v3946_v36, %s3765_s26  ;;  %1627 = vrot.lane.b32.xlu1 %v3946_v36, %s3766_s30 }
 0x100   : > { %1563 = vrot.lane.b32.xlu0 %v3946_v36, %s3767_s7 }
 0x107   : > { %1547 = vrot.lane.b32.xlu2 %v3946_v36, %s3768_s10  ;;  %1579 = vrot.lane.b32.xlu1 %v3946_v36, %s3769_s8 }
 0x108   : > { %1645 = vrot.lane.b32.xlu0 %v3954_v47, %s3763_s20  ;;  %s3776_s20 = smov 11  }
 0x10f   : > { %1629 = vrot.lane.b32.xlu2 %v3954_v47, %s3766_s30  ;;  %1613 = vrot.lane.b32.xlu1 %v3954_v47, %s3764_s25  ;;  %s3777_s25 = smov 37   ;;  %s317_s30 = scalar_lea.vmem [#allocation10], %s3435_s29 }
 0x110   : > { %1597 = vrot.lane.b32.xlu0 %v3954_v47, %s3765_s26  ;;  %s3778_s26 = smov 59  }
 0x117   : > { %1581 = vrot.lane.b32.xlu2 %v3954_v47, %s3769_s8  ;;  %1565 = vrot.lane.b32.xlu1 %v3954_v47, %s3767_s7  ;;  %s3443_s7 = sshll.u32 %s3838_s28, 4  ;;  %s3305_s28 = scalar_lea.sflag [#allocation4], %s3929_s12 }
 0x118   : > { %1549 = vrot.lane.b32.xlu0 %v3954_v47, %s3768_s10  ;;  %s3316_s8 = scalar_lea.hbm %s5561_s6, %s3443_s7 }
 0x11f   : > { %1533 = vrot.lane.b32.xlu2 %v3954_v47, %s3770_s15  ;;  %1531 = vrot.lane.b32.xlu1 %v3946_v36, %s3770_s15  ;;  %s3318_s15 = sshll.u32 %s317_s30, 4  ;;  %s3319_s15 = int_to_ptr.vmem [resolvable:$true] %s3318_s15 }
 0x120   : > { %2210 = vrot.lane.b32.xlu0 %v3946_v36, %s3771_s16 }
 0x127   : > { %2140 = vrot.lane.b32.xlu2 %v3946_v36, %s3772_s14  ;;  %2212 = vrot.lane.b32.xlu1 %v3954_v47, %s3771_s16  ;;  %s3320_s16 = sshll.u32 %s3316_s8, 4  ;;  %s3321_s16 = int_to_ptr.hbm [resolvable:$true] %s3320_s16 }
 0x128   : > { %2780 = vrot.lane.b32.xlu0 %v3946_v36, %s3773_s17 }
 0x129   : > { %v3989_v48 = vpop.permute.xlu2 %709 }
 0x12f   : > { %2764 = vrot.lane.b32.xlu2 %v3946_v36, %s3774_s18  ;;  %2805 = vrot.lane.b32.xlu1 %v3946_v36, %s3775_s19 }
 0x130   : > { %2142 = vrot.lane.b32.xlu0 %v3954_v47, %s3772_s14  ;;  %s3685_s14 = sshra.s32 %s3321_s16, 4  ;;  %s3686_s14 = int_to_ptr.hbm [resolvable:$true] %s3685_s14 }
 0x131   : > { %v3994_v49 = vpop.permute.xlu2 %661  ;;  %p3692_p12 = scmp.lt.s32.totalorder %s3686_s14, %s5561_s6 }
 0x137   : > { %2807 = vrot.lane.b32.xlu2 %v3954_v47, %s3775_s19  ;;  %2748 = vrot.lane.b32.xlu1 %v3946_v36, %s3776_s20 }
 0x138   : > { %2732 = vrot.lane.b32.xlu0 %v3946_v36, %s3777_s25 }
 0x139   : > { %v728_v53 = vpop.permute.xlu2 %727 }
 0x13f   : > { %2750 = vrot.lane.b32.xlu2 %v3954_v47, %s3776_s20  ;;  %2782 = vrot.lane.b32.xlu1 %v3954_v47, %s3773_s17  ;;  %s3687_s17 = scalar_lea.hbm %s3686_s14, 16  ;;  %s3691_s20 = scalar_lea.hbm %s5561_s6, 32 }
 0x140   : > { %2766 = vrot.lane.b32.xlu0 %v3954_v47, %s3774_s18  ;;  %p3688_p1 = scmp.ne.s32.totalorder %s3686_s14, %s3687_s17  ;;  %p3693_p8 = scmp.lt.s32.totalorder %s3691_s20, %s3687_s17 }
 0x141   : > { %v726_v50 = vpop.permute.xlu1 %725  ;;  %v696_v62 = vpop.permute.xlu2 %695 }
 0x142   : > { %v742_v52 = vpop.permute.xlu0 %741  ;;  %v4007_v59 = vsel %vm729_vm1, %v726_v50, %v728_v53  ;;  %v4013_v1 = vsel %vm729_vm1, %v728_v53, %v726_v50  ;;  %v4073_v50 = vld [vmem:[#allocation7] ss:$8 sm:$0x3]  ;;  %v687_v53 = vperm.slane %v685_v38, 0  ;;  %vm1535_vm1 = vcmp.lt.s32.totalorder %v3999_v54, 119  ;;  %p3689_p3 = pnand %p3688_p1, %p3890_p13  ;;  %p3694_p7 = por %p3693_p8, %p3692_p12 }
 0x143   : > { %v739_v0 = vmul.f32 %v735_v58, %v4007_v59  ;;  %5578 = vst [vmem:[#allocation15_spill] sm:$0xff] %v4013_v1  ;;  %v740_v8 = vmul.f32 %v736_v63, %v4013_v1  ;;  %v639_v60 = vperm.slane %v4073_v50, 0 }
 0x144   : > { %p3690_p5 = pneg %p3689_p3 }
 0x145   : > { %v4024_v9 = vand.u32 4294901760, %v739_v0  ;;  %v4034_v19 = vand.u32 4294901760, %v740_v8 }
 0x146   : > { %p3695_p9 = pnand %p3694_p7, %p3690_p5 }
 0x147   : > { %2707 = vrot.lane.b32.xlu2 %v3946_v36, %s3778_s26  ;;  %2734 = vrot.lane.b32.xlu1 %v3954_v47, %s3777_s25  ;;  %v4039_v21 = vsub.f32 %v739_v0, %v4024_v9  ;;  %v4059_v39 = vsub.f32 %v740_v8, %v4034_v19 }
 0x148   : > { %2709 = vrot.lane.b32.xlu0 %v3954_v47, %s3778_s26 }
 0x149   : > { %v694_v56 = vpop.permute.xlu1 %693  ;;  %v648_v27 = vpop.permute.xlu2 %647  ;;  %v811_v42 = vand.u32 4294901760, %v4039_v21 }
 0x14a   : > { %v4005_v57 = vpop.permute.xlu0 %677  ;;  %v698_v4 = vsel %vm697_vm2, %v694_v56, %v696_v62  ;;  %v699_v22 = vsel %vm697_vm2, %v696_v62, %v694_v56  ;;  %v688_v56 = vperm.slane %v685_v38, 1  ;;  %v1048_v62 = vand.u32 4294901760, %v4059_v39 }
 0x14b   : > { %v707_v12 = vmul.f32 %v703_v2, %v698_v4  ;;  %v708_v40 = vmul.f32 %v704_v14, %v699_v22  ;;  %v812_v61 = vsub.f32 %v4039_v21, %v811_v42  ;;  %vm2214_vm2 = vcmp.lt.s32.totalorder %v3999_v54, 103 }
 0x14d   : > { %v4043_v23 = vand.u32 4294901760, %v707_v12  ;;  %v4092_v63 = vand.u32 4294901760, %v708_v40 }
 0x14f   : > { %v4071_v46 = vsub.f32 %v707_v12, %v4043_v23 }
 0x151   : > { %v4015_v3 = vpop.permute.xlu1 %645 }
 0x152   : > { %v712_v6 = vpop.permute.xlu0 %711  ;;  %v4053_v33 = vsel %vm649_vm4, %v648_v27, %v4015_v3 }
 0x153   : > { %v714_v10 = vsel %vm713_vm3, %v3989_v48, %v712_v6  ;;  %v715_v43 = vsel %vm713_vm3, %v712_v6, %v3989_v48  ;;  %v659_v51 = vmul.f32 %v655_v16, %v4053_v33  ;;  %vm2144_vm3 = vcmp.lt.s32.totalorder %v3999_v54, 25 }
 0x154   : > { %v723_v15 = vmul.f32 %v719_v5, %v714_v10  ;;  %v724_v58 = vmul.f32 %v720_v28, %v715_v43  ;;  %v823_v5 = vand.u32 4294901760, %v4071_v46  ;;  %v757_v28 = vld [vmem:[#allocation5] sm:$0xff] }
 0x155   : > { %v4099_v6 = vand.u32 4294901760, %v659_v51  ;;  %v760_v13 = vsel %vm758_vm9, %v757_v28, 0 }
 0x156   : > { %v4046_v25 = vand.u32 4294901760, %v723_v15 }
 0x158   : > { %v4068_v45 = vsub.f32 %v723_v15, %v4046_v25  ;;  %v640_v15 = vperm.slane %v4073_v50, 1 }
 0x159   : > { %v744_v26 = vpop.permute.xlu1 %743 }
 0x15a   : > { %v746_v29 = vsel %vm745_vm5, %v742_v52, %v744_v26  ;;  %v747_v30 = vsel %vm745_vm5, %v744_v26, %v742_v52  ;;  %v664_v32 = vpop.permute.xlu0 %663  ;;  %v817_v4 = vand.u32 4294901760, %v4068_v45  ;;  %vm2784_vm5 = vcmp.lt.s32.totalorder %v3999_v54, 91 }
 0x15b   : > { %v755_v34 = vmul.f32 %v751_v17, %v746_v29  ;;  %v756_v35 = vmul.f32 %v752_v18, %v747_v30  ;;  %v667_v37 = vsel %vm665_vm6, %v664_v32, %v3994_v49  ;;  %v4125_v17 = vand.u32 4294901760, %v724_v58 }
 0x15c   : > { %v675_v41 = vmul.f32 %v671_v20, %v667_v37  ;;  %v666_v18 = vsel %vm665_vm6, %v3994_v49, %v664_v32  ;;  %v4142_v49 = vsub.f32 %v708_v40, %v4092_v63  ;;  %v813_v30 = vand.u32 4294901760, %v812_v61 }
 0x15d   : > { %v4065_v44 = vand.u32 4294901760, %v755_v34  ;;  %v4076_v52 = vand.u32 4294901760, %v756_v35  ;;  %v4147_v32 = vsub.f32 %v659_v51, %v4099_v6  ;;  %v4160_v40 = vsub.f32 %v724_v58, %v4125_v17 }
 0x15e   : > { %v4082_v48 = vand.u32 4294901760, %v675_v41  ;;  %vm2768_vm6 = vcmp.lt.s32.totalorder %v3999_v54, 117 }
 0x15f   : > { %v4080_v55 = vsub.f32 %v755_v34, %v4065_v44  ;;  %771 = vmatpush.msrb.mxu0 %v4065_v44  ;;  %903 = vmatpush.msrb.mxu3 %v4065_v44  ;;  %v4102_v8 = vsub.f32 %v756_v35, %v4076_v52  ;;  %v676_v34 = vmul.f32 %v672_v31, %v666_v18  ;;  %v5562_v50 = vand.u32 4294901760, %v4160_v40 }
 0x160   : > { %v4118_v16 = vsub.f32 %v675_v41, %v4082_v48 }
 0x161   : > { %v805_v0 = vand.u32 4294901760, %v4080_v55  ;;  %v680_v2 = vpop.permute.xlu1 %679  ;;  %773 = vmatpush.msrb.mxu0 %v4024_v9  ;;  %866 = vmatpush.msrb.mxu2 %v4080_v55  ;;  %v1042_v29 = vand.u32 4294901760, %v4102_v8 }
 0x162   : > { %v682_v10 = vsel %vm681_vm7, %v4005_v57, %v680_v2  ;;  %v683_v11 = vsel %vm681_vm7, %v680_v2, %v4005_v57  ;;  %905 = vmatpush.msrb.mxu3 %v4024_v9  ;;  %v4123_v57 = vsel %vm649_vm4, %v4015_v3, %v648_v27  ;;  %v818_v3 = vsub.f32 %v4068_v45, %v817_v4  ;;  %v629_v31 = vpop.permute.xlu0 %628 }
 0x163   : > { %v691_v12 = vmul.f32 %v687_v53, %v683_v11  ;;  %775 = vmatpush.msrb.mxu0 %v4046_v25  ;;  %869 = vmatpush.msrb.mxu2 %v4039_v21  ;;  %v806_v14 = vsub.f32 %v4080_v55, %v805_v0  ;;  %v692_v20 = vmul.f32 %v688_v56, %v682_v10  ;;  %v835_v37 = vand.u32 4294901760, %v4118_v16 }
 0x164   : > { %907 = vmatpush.msrb.mxu3 %v4046_v25  ;;  %v824_v27 = vsub.f32 %v4071_v46, %v823_v5  ;;  %v660_v38 = vmul.f32 %v656_v24, %v4123_v57  ;;  %v819_v51 = vand.u32 4294901760, %v818_v3  ;;  %v4169_v24 = vand.u32 4294901760, %v760_v13 }
 0x165   : > { %v4131_v22 = vand.u32 4294901760, %v691_v12  ;;  %777 = vmatpush.msrb.mxu0 %v4043_v23  ;;  %872 = vmatpush.msrb.mxu2 %v4068_v45  ;;  %v807_v26 = vand.u32 4294901760, %v806_v14  ;;  %v4162_v41 = vand.u32 4294901760, %v692_v20  ;;  %v1043_v61 = vsub.f32 %v4102_v8, %v1042_v29 }
 0x166   : > { %909 = vmatpush.msrb.mxu3 %v4043_v23  ;;  %v825_v53 = vand.u32 4294901760, %v824_v27  ;;  %v841_v2 = vand.u32 4294901760, %v4147_v32  ;;  %v4181_v10 = vand.u32 4294901760, %v676_v34  ;;  %v836_v14 = vsub.f32 %v4118_v16, %v835_v37 }
 0x167   : > { %779 = vmatpush.msrb.mxu0 %v4131_v22  ;;  %808 = vmatpush.msrb.mxu1 %v807_v26  ;;  %v4153_v35 = vsub.f32 %v691_v12, %v4131_v22  ;;  %v4193_v18 = vsub.f32 %v692_v20, %v4162_v41  ;;  %v4201_v3 = vand.u32 4294901760, %v660_v38  ;;  %vm2809_vm4 = vcmp.lt.s32.totalorder %v3999_v54, 69 }
 0x168   : > { %875 = vmatpush.msrb.mxu2 %v4071_v46  ;;  %911 = vmatpush.msrb.mxu3 %v4131_v22  ;;  %v842_v20 = vsub.f32 %v4147_v32, %v841_v2  ;;  %vm2752_vm7 = vcmp.lt.s32.totalorder %v3999_v54, 11 }
 0x169   : > { %v631_v43 = vpop.permute.xlu1 %630  ;;  %781 = vmatpush.msrb.mxu0 %v4082_v48  ;;  %814 = vmatpush.msrb.mxu1 %v813_v30  ;;  %v829_v7 = vand.u32 4294901760, %v4153_v35  ;;  %v1060_v30 = vand.u32 4294901760, %v4142_v49 }
 0x16a   : > { %v635_v56 = vsel %vm634_vm8, %v629_v31, %v631_v43  ;;  %v636_v58 = vsel %vm634_vm8, %v631_v43, %v629_v31  ;;  %878 = vmatpush.msrb.mxu2 %v4153_v35  ;;  %913 = vmatpush.msrb.mxu3 %v4082_v48  ;;  %v4217_v31 = vsub.f32 %v676_v34, %v4181_v10  ;;  %v1044_v43 = vand.u32 4294901760, %v1043_v61 }
 0x16b   : > { %v643_v11 = vmul.f32 %v639_v60, %v636_v58  ;;  %783 = vmatpush.msrb.mxu0 %v4099_v6  ;;  %820 = vmatpush.msrb.mxu1 %v819_v51  ;;  %v830_v12 = vsub.f32 %v4153_v35, %v829_v7  ;;  %v644_v26 = vmul.f32 %v640_v15, %v635_v56  ;;  %v837_v51 = vand.u32 4294901760, %v836_v14 }
 0x16c   : > { %881 = vmatpush.msrb.mxu2 %v4118_v16  ;;  %915 = vmatpush.msrb.mxu3 %v4099_v6  ;;  %v4199_v60 = vsub.f32 %v760_v13, %v4169_v24  ;;  %v1049_v15 = vsub.f32 %v4059_v39, %v1048_v62  ;;  %v1055_v58 = vsub.f32 %v4160_v40, %v5562_v50  ;;  %v1066_v34 = vand.u32 4294901760, %v4193_v18  ;;  %v4244_v50 = vpop.permute.xlu2 %1643  ;;  %v627_v16 = vld [vmem:[#allocation2] sm:$0xff] }
 0x16d   : > { %v4203_v27 = vand.u32 4294901760, %v643_v11  ;;  %826 = vmatpush.msrb.mxu1 %v825_v53  ;;  %v831_v28 = vand.u32 4294901760, %v830_v12  ;;  %v4221_v56 = vand.u32 4294901760, %v644_v26  ;;  %v4233_v61 = vsub.f32 %v660_v38, %v4201_v3 }
 0x16e   : > { %884 = vmatpush.msrb.mxu2 %v4147_v32  ;;  %v4214_v13 = vand.u32 4294901760, %v4199_v60  ;;  %v1050_v55 = vand.u32 4294901760, %v1049_v15  ;;  %v1061_v14 = vsub.f32 %v4142_v49, %v1060_v30  ;;  %v1072_v38 = vand.u32 4294901760, %v4217_v31 }
 0x16f   : > { %785 = vmatpush.msrb.mxu0 %v4203_v27  ;;  %832 = vmatpush.msrb.mxu1 %v831_v28  ;;  %v846_v53 = vsub.f32 %v643_v11, %v4203_v27  ;;  %v1056_v21 = vand.u32 4294901760, %v1055_v58  ;;  %v1067_v15 = vsub.f32 %v4193_v18, %v1066_v34  ;;  %vm2736_vm8 = vcmp.lt.s32.totalorder %v3999_v54, 37 }
 0x170   : > { %917 = vmatpush.msrb.mxu3 %v4203_v27  ;;  %v789_v12 = vsub.f32 %v4199_v60, %v4214_v13 }
 0x171   : > { %936 = vmatpush.msra.mxu0 %v805_v0  ;;  %838 = vmatpush.msrb.mxu1 %v837_v51  ;;  %v847_v11 = vand.u32 4294901760, %v846_v53  ;;  %v843_v0 = vand.u32 4294901760, %v842_v20  ;;  %v1078_v20 = vand.u32 4294901760, %v4233_v61  ;;  %v1062_v51 = vand.u32 4294901760, %v1061_v14  ;;  %v4275_v58 = vpop.permute.xlu1 %1627 }
 0x172   : > { %1045 = vmatpush.msra.mxu3 %v1044_v43  ;;  %887 = vmatpush.msrb.mxu2 %v846_v53  ;;  %v4240_v28 = vand.u32 4294901760, %v789_v12  ;;  %v4247_v43 = vsub.f32 %v644_v26, %v4221_v56  ;;  %v1073_v26 = vsub.f32 %v4217_v31, %v1072_v38  ;;  %v1068_v45 = vand.u32 4294901760, %v1067_v15  ;;  %v4418_v15 = vld [vmem:[#allocation7 + $0x13] ss:$8 sm:$0x3] }
 0x173   : > { %940 = vmatpush.msra.mxu0 %v811_v42  ;;  %844 = vmatpush.msrb.mxu1 %v843_v0  ;;  %v848_v42 = vsub.f32 %v846_v53, %v847_v11  ;;  %v4264_v53 = vpop.permute.xlu0 %1611  ;;  %v1079_v46 = vsub.f32 %v4233_v61, %v1078_v20  ;;  %v4402_v0 = vld [vmem:[#allocation7 + $0x14] ss:$8 sm:$0x3] }
 0x174   : > { %1008 = vmatpush.msra.mxu2 %v4076_v52  ;;  %1051 = vmatpush.msra.mxu3 %v1050_v55 }
 0x175   : > { %944 = vmatpush.msra.mxu0 %v817_v4  ;;  %v849_v12 = vand.u32 4294901760, %v848_v42  ;;  %v1084_v4 = vand.u32 4294901760, %v4247_v43  ;;  %v1080_v35 = vand.u32 4294901760, %v1079_v46  ;;  %921 = vmatmul.f32.vlgmr.msrb.gmra.mxu3 %v4214_v13 }
 0x176   : > { %1010 = vmatpush.msra.mxu2 %v4034_v19  ;;  %1057 = vmatpush.msra.mxu3 %v1056_v21 }
 0x177   : > { %791 = vmatmul.f32.vlgmr.msrb.gmra.mxu0 %v4240_v28  ;;  %850 = vmatpush.msrb.mxu1 %v849_v12 }
 0x178   : > { %948 = vmatpush.msra.mxu0 %v823_v5  ;;  %1012 = vmatpush.msra.mxu2 %v4125_v17  ;;  %v1074_v5 = vand.u32 4294901760, %v1073_v26 }
 0x179   : > { %1063 = vmatpush.msra.mxu3 %v1062_v51  ;;  %979 = vmatpush.msra.mxu1 %v4065_v44  ;;  %v1085_v44 = vsub.f32 %v4247_v43, %v1084_v4 }
 0x17a   : > { %952 = vmatpush.msra.mxu0 %v829_v7  ;;  %1014 = vmatpush.msra.mxu2 %v4092_v63  ;;  %v4284_v7 = vpop.permute.xlu2 %1595 }
 0x17b   : > { %1069 = vmatpush.msra.mxu3 %v1068_v45  ;;  %981 = vmatpush.msra.mxu1 %v4024_v9  ;;  %v1086_v9 = vand.u32 4294901760, %v1085_v44  ;;  %v4292_v32 = vpop.permute.xlu0 %1563 }
 0x17c   : > { %956 = vmatpush.msra.mxu0 %v835_v37  ;;  %1016 = vmatpush.msra.mxu2 %v4162_v41 }
 0x17d   : > { %1075 = vmatpush.msra.mxu3 %v1074_v5  ;;  %983 = vmatpush.msra.mxu1 %v4046_v25  ;;  %v4302_v25 = vpop.permute.xlu1 %1579  ;;  %v1589_v5 = vperm.slane %v4418_v15, 0 }
 0x17e   : > { %960 = vmatpush.msra.mxu0 %v841_v2  ;;  %1018 = vmatpush.msra.mxu2 %v4181_v10  ;;  %v4357_v2 = vld [vmem:[#allocation7 + $0x17] ss:$8 sm:$0x3] }
 0x17f   : > { %1081 = vmatpush.msra.mxu3 %v1080_v35  ;;  %985 = vmatpush.msra.mxu1 %v4043_v23  ;;  %v1237_v23 = vsel %vm331_vm0, %v627_v16, 0  ;;  %v1654_v51 = vperm.slane %v4357_v2, 1  ;;  %v4459_v35 = vld [vmem:[#allocation7 + $0x11] ss:$8 sm:$0x3]  ;;  %vm1551_vm0 = vcmp.lt.s32.totalorder %v3999_v54, 112 }
 0x180   : > { %964 = vmatpush.msra.mxu0 %v847_v11  ;;  %1020 = vmatpush.msra.mxu2 %v4201_v3 }
 0x181   : > { %1087 = vmatpush.msra.mxu3 %v1086_v9  ;;  %890 = vmatmul.f32.vlgmr.msrb.gmra.mxu2 %v4199_v60 }
 0x182   : > { %1103 = vmatpush.msrb.mxu0 %v4102_v8  ;;  %987 = vmatpush.msra.mxu1 %v4131_v22  ;;  %v4310_v22 = vand.u32 4294901760, %v3954_v47  ;;  %v4312_v37 = vpop.permute.xlu2 %1547  ;;  %v4316_v8 = vand.u32 4294901760, %v1237_v23 }
 0x183   : > { %1216 = vmatpush.msrb.mxu3 %v4076_v52  ;;  %1022 = vmatpush.msra.mxu2 %v4221_v56 }
 0x184   : > { %1106 = vmatpush.msrb.mxu0 %v4059_v39  ;;  %989 = vmatpush.msra.mxu1 %v4082_v48  ;;  %v5579_v48 = vand.u32 4294901760, %v4160_v40  ;;  %v4327_v39 = vsub.f32 %v3954_v47, %v4310_v22  ;;  %v4342_v47 = vand.u32 4294901760, %v3946_v36 }
 0x185   : > { %1173 = vmatpush.msrb.mxu2 %v1042_v29  ;;  %1218 = vmatpush.msrb.mxu3 %v4034_v19 }
 0x186   : > { %1109 = vmatpush.msrb.mxu0 %v4160_v40  ;;  %852 = vmatmul.f32.vlgmr.msrb.gmra.mxu1 %v4169_v24  ;;  %v1428_v29 = vand.u32 4294901760, %v4327_v39  ;;  %v4347_v40 = vpop.permute.xlu1 %1613 }
 0x187   : > { %1177 = vmatpush.msrb.mxu2 %v1048_v62  ;;  %1220 = vmatpush.msrb.mxu3 %v4125_v17  ;;  %v4332_v62 = vsub.f32 %v1237_v23, %v4316_v8  ;;  %v1616_v21 = vsel %vm1615_vm12, %v4264_v53, %v4347_v40 }
 0x188   : > { %991 = vmatpush.msra.mxu1 %v4099_v6  ;;  %1112 = vmatpush.msrb.mxu0 %v4142_v49  ;;  %v4334_v6 = vpop.permute.xlu0 %1645 }
 0x189   : > { %1181 = vmatpush.msrb.mxu2 %v5579_v48  ;;  %1222 = vmatpush.msrb.mxu3 %v4092_v63 }
 0x18a   : > { %966 = vmatmul.f32.vlgmr.msra.gmra.mxu0 %v4169_v24  ;;  %993 = vmatpush.msra.mxu1 %v4203_v27  ;;  %v1630_v49 = vpop.permute.xlu2 %1629 }
 0x18b   : > { %1089 = vmatmul.f32.vlgmr.msra.gmra.mxu3 %v4169_v24  ;;  %1115 = vmatpush.msrb.mxu0 %v4193_v18  ;;  %v1635_v18 = vld [vmem:[#allocation7 + $0x16] ss:$8 sm:$0x3]  ;;  %v4396_v11 = vsel %vm1631_vm11, %v4275_v58, %v1630_v49 }
 0x18c   : > { %1140 = vmatpush.msrb.mxu1 %v4076_v52  ;;  %1185 = vmatpush.msrb.mxu2 %v1060_v30  ;;  %v4355_v52 = vand.u32 4294901760, %v4332_v62  ;;  %v4383_v30 = vsel %vm1647_vm10, %v4244_v50, %v4334_v6  ;;  %v1638_v42 = vperm.slane %v1635_v18, 1 }
 0x18d   : > { %1224 = vmatpush.msrb.mxu3 %v4162_v41  ;;  %1028 = vmatmul.f32.vlgmr.msra.gmra.mxu2 %v4240_v28 }
 0x18e   : > { %1118 = vmatpush.msrb.mxu0 %v4217_v31  ;;  %1142 = vmatpush.msrb.mxu1 %v4034_v19  ;;  %v1281_v19 = vsub.f32 %v3946_v36, %v4342_v47  ;;  %v1653_v36 = vperm.slane %v4357_v2, 0  ;;  %v1259_v27 = vsub.f32 %v4332_v62, %v4355_v52  ;;  %v1637_v31 = vperm.slane %v1635_v18, 0  ;;  %v4409_v28 = vpop.permute.xlu1 %1565 }
 0x18f   : > { %1189 = vmatpush.msrb.mxu2 %v1066_v34  ;;  %1226 = vmatpush.msrb.mxu3 %v4181_v10  ;;  %v4387_v34 = vld [vmem:[#allocation7 + $0x15] ss:$8 sm:$0x3] }
 0x190   : > { %1121 = vmatpush.msrb.mxu0 %v4233_v61  ;;  %1144 = vmatpush.msrb.mxu1 %v4125_v17  ;;  %v1429_v17 = vsub.f32 %v4327_v39, %v1428_v29  ;;  %v4389_v61 = vpop.permute.xlu0 %1597  ;;  %v1657_v55 = vmul.f32 %v1653_v36, %v4383_v30  ;;  %v1621_v14 = vperm.slane %v4387_v34, 0  ;;  %v1622_v48 = vperm.slane %v4387_v34, 1 }
 0x191   : > { %1193 = vmatpush.msrb.mxu2 %v1072_v38  ;;  %1228 = vmatpush.msrb.mxu3 %v4201_v3  ;;  %v4434_v26 = vsel %vm1599_vm13, %v4284_v7, %v4389_v61 }
 0x192   : > { %995 = vmatmul.f32.vlgmr.msra.gmra.mxu1 %v4169_v24  ;;  %1124 = vmatpush.msrb.mxu0 %v4247_v43  ;;  %v1641_v43 = vmul.f32 %v1637_v31, %v4396_v11  ;;  %v4428_v12 = vand.u32 4294901760, %v1657_v55  ;;  %v1625_v45 = vmul.f32 %v1621_v14, %v1616_v21 }
 0x193   : > { %1146 = vmatpush.msrb.mxu1 %v4092_v63  ;;  %1197 = vmatpush.msrb.mxu2 %v1078_v20  ;;  %v1282_v63 = vand.u32 4294901760, %v1281_v19  ;;  %v1605_v20 = vperm.slane %v4402_v0, 0 }
 0x194   : > { %1230 = vmatpush.msrb.mxu3 %v4221_v56  ;;  %1127 = vmatmul.f32.vlgmr.msrb.gmra.mxu0 %v4199_v60  ;;  %v1430_v60 = vand.u32 4294901760, %v1429_v17  ;;  %v4446_v46 = vand.u32 4294901760, %v1641_v43  ;;  %v4469_v16 = vsub.f32 %v1657_v55, %v4428_v12  ;;  %v4487_v17 = vld [vmem:[#allocation7 + $0x10] ss:$8 sm:$0x3]  ;;  %v4522_v55 = vsel %vm1599_vm13, %v4389_v61, %v4284_v7 }
 0x195   : > { %1232 = vmatmul.f32.vlgmr.msrb.gmra.mxu3 %v4169_v24  ;;  %1255 = vmatpush.msra.mxu0 %v4342_v47  ;;  %v1283_v38 = vsub.f32 %v1281_v19, %v1282_v63  ;;  %v1541_v14 = vperm.slane %v4487_v17, 0 }
 0x196   : > { %1331 = vmatpush.msra.mxu3 %v4342_v47  ;;  %1148 = vmatpush.msrb.mxu1 %v4162_v41  ;;  %v4405_v41 = vand.u32 4294901760, %v1259_v27  ;;  %v4490_v18 = vsub.f32 %v1641_v43, %v4446_v46 }
 0x197   : > { %1201 = vmatpush.msrb.mxu2 %v1084_v4  ;;  %1357 = vmatpush.msrb.mxu0 %v1282_v63  ;;  %v1284_v4 = vand.u32 4294901760, %v1283_v38  ;;  %v4504_v63 = vpop.permute.xlu1 %1531 }
 0x198   : > { %1431 = vmatpush.msrb.mxu3 %v1430_v60  ;;  %1203 = vmatmul.f32.vlgmr.msrb.gmra.mxu2 %v4169_v24  ;;  %v1582_v24 = vpop.permute.xlu2 %1581  ;;  %v1550_v23 = vpop.permute.xlu0 %1549  ;;  %v5567_v60 = vand.u32 4294901760, %v4469_v16  ;;  %v5566_v7 = vand.u32 4294901760, %v4490_v18 }
 0x199   : > { %1308 = vmatpush.msra.mxu2 %v1281_v19  ;;  %1150 = vmatpush.msrb.mxu1 %v4181_v10  ;;  %v4425_v10 = vsel %vm1631_vm11, %v1630_v49, %v4275_v58  ;;  %v4449_v58 = vld [vmem:[#allocation7 + $0x12] ss:$8 sm:$0x3]  ;;  %v1606_v49 = vperm.slane %v4402_v0, 1  ;;  %v1569_v19 = vsel %vm1567_vm15, %v4409_v28, %v4292_v32  ;;  %v4502_v27 = vsel %vm1551_vm0, %v1550_v23, %v4312_v37 }
 0x19a   : > { %v4454_v44 = vmul.f32 %v1638_v42, %v4425_v10  ;;  %v1573_v2 = vperm.slane %v4449_v58, 0  ;;  %v4512_v34 = vsel %vm1583_vm14, %v4302_v25, %v1582_v24  ;;  %v1574_v42 = vperm.slane %v4449_v58, 1 }
 0x19b   : > { %1401 = vmatpush.msrb.mxu2 %v4310_v22  ;;  %1152 = vmatpush.msrb.mxu1 %v4201_v3  ;;  %v4442_v3 = vsel %vm1647_vm10, %v4334_v6, %v4244_v50  ;;  %v1590_v50 = vperm.slane %v4418_v15, 1  ;;  %v4475_v6 = vand.u32 4294901760, %v1625_v45  ;;  %vm2711_vm10 = vcmp.lt.s32.totalorder %v3999_v54, 59 }
 0x19c   : > { %1261 = vmatmul.f32.vlgmr.msra.gmra.mxu0 %v4405_v41  ;;  %v1658_v9 = vmul.f32 %v1654_v51, %v4442_v3  ;;  %v4507_v31 = vand.u32 4294901760, %v4454_v44  ;;  %v1577_v0 = vmul.f32 %v1573_v2, %v1569_v19  ;;  %v1610_v51 = vmul.f32 %v1606_v49, %v4522_v55 }
 0x19d   : > { %1154 = vmatpush.msrb.mxu1 %v4221_v56  ;;  %1335 = vmatmul.f32.vlgmr.msra.gmra.mxu3 %v4355_v52  ;;  %v1609_v56 = vmul.f32 %v1605_v20, %v4434_v26  ;;  %v4540_v61 = vmul.f32 %v1590_v50, %v4512_v34 }
 0x19e   : > { %1158 = vmatmul.f32.vlgmr.msrb.gmra.mxu1 %v4214_v13  ;;  %1454 = vmatpush.msra.mxu0 %v4327_v39  ;;  %v4465_v13 = vsel %vm1583_vm14, %v1582_v24, %v4302_v25  ;;  %v1617_v39 = vsel %vm1615_vm12, %v4347_v40, %v4264_v53  ;;  %v4515_v53 = vand.u32 4294901760, %v1658_v9  ;;  %v4528_v25 = vsub.f32 %v1625_v45, %v4475_v6 }
 0x19f   : > { %1285 = vmatpush.msra.mxu1 %v1284_v4  ;;  %1525 = vmatpush.msra.mxu3 %v4310_v22  ;;  %v1593_v36 = vmul.f32 %v1589_v5, %v4465_v13  ;;  %v1626_v38 = vmul.f32 %v1622_v48, %v1617_v39  ;;  %v1558_v45 = vperm.slane %v4459_v35, 1  ;;  %v1568_v4 = vsel %vm1567_vm15, %v4292_v32, %v4409_v28 }
 0x1a0   : > { %1311 = vmatmul.f32.vlgmr.msra.gmra.mxu2 %v4332_v62  ;;  %v1534_v40 = vpop.permute.xlu2 %1533  ;;  %v4551_v20 = vsub.f32 %v1658_v9, %v4515_v53  ;;  %v4564_v5 = vand.u32 4294901760, %v1577_v0  ;;  %v4572_v50 = vsub.f32 %v4454_v44, %v4507_v31  ;;  %v1714_v32 = vsub.f32 %v4490_v18, %v5566_v7 }
 0x1a1   : > { %1379 = vmatpush.msrb.mxu1 %v4342_v47  ;;  %1503 = vmatpush.msra.mxu2 %v1428_v29  ;;  %v1557_v47 = vperm.slane %v4459_v35, 0  ;;  %v4497_v29 = vand.u32 4294901760, %v1609_v56  ;;  %v4534_v21 = vsel %vm1535_vm1, %v1534_v40, %v4504_v63  ;;  %v4542_v24 = vand.u32 4294901760, %v1593_v36 }
 0x1a2   : > { %v1545_v58 = vmul.f32 %v1541_v14, %v4534_v21  ;;  %v4585_v28 = vsel %vm1551_vm0, %v4312_v37, %v1550_v23  ;;  %v1542_v9 = vperm.slane %v4487_v17, 1  ;;  %v4595_v49 = vand.u32 4294901760, %v4540_v61  ;;  %v1660_v23 = vld [vmem:[#allocation5 + $0x8] sm:$0xff] }
 0x1a3   : > { %v1561_v43 = vmul.f32 %v1557_v47, %v4502_v27  ;;  %v4548_v15 = vsub.f32 %v1609_v56, %v4497_v29  ;;  %v4574_v56 = vand.u32 4294901760, %v1626_v38  ;;  %v4591_v44 = vsub.f32 %v1593_v36, %v4542_v24 }
 0x1a4   : > { %1359 = vmatmul.f32.vlgmr.msrb.gmra.mxu0 %v4316_v8  ;;  %v5565_v2 = vand.u32 4294901760, %v4551_v20  ;;  %v4598_v19 = vand.u32 4294901760, %v1610_v51  ;;  %v1578_v37 = vmul.f32 %v1574_v42, %v1568_v4  ;;  %v4602_v47 = vand.u32 4294901760, %v1545_v58 }
 0x1a5   : > { %1433 = vmatmul.f32.vlgmr.msrb.gmra.mxu3 %v4316_v8  ;;  %1673 = vmatpush.msrb.mxu0 %v4428_v12  ;;  %v4576_v35 = vand.u32 4294901760, %v1561_v43  ;;  %v5563_v48 = vand.u32 4294901760, %v4548_v15  ;;  %v4610_v39 = vsub.f32 %v1577_v0, %v4564_v5  ;;  %v4613_v14 = vsub.f32 %v1626_v38, %v4574_v56 }
 0x1a6   : > { %1287 = vmatmul.f32.vlgmr.msra.gmra.mxu1 %v4316_v8  ;;  %1805 = vmatpush.msrb.mxu3 %v4428_v12  ;;  %v1715_v42 = vand.u32 4294901760, %v1714_v32  ;;  %v5568_v38 = vand.u32 4294901760, %v4591_v44  ;;  %v4633_v32 = vsub.f32 %v1610_v51, %v4598_v19 }
 0x1a7   : > { %1477 = vmatpush.msra.mxu1 %v4310_v22  ;;  %1675 = vmatpush.msrb.mxu0 %v4446_v46  ;;  %v1708_v22 = vsub.f32 %v4469_v16, %v5567_v60  ;;  %v4619_v4 = vsub.f32 %v1561_v43, %v4576_v35  ;;  %v1726_v0 = vsub.f32 %v4548_v15, %v5563_v48  ;;  %v4635_v43 = vand.u32 4294901760, %v1578_v37 }
 0x1a8   : > { %1407 = vmatmul.f32.vlgmr.msrb.gmra.mxu2 %v4405_v41  ;;  %1807 = vmatpush.msrb.mxu3 %v4446_v46  ;;  %v5564_v41 = vand.u32 4294901760, %v4528_v25  ;;  %v5570_v51 = vand.u32 4294901760, %v4610_v39  ;;  %v4650_v48 = vsub.f32 %v4540_v61, %v4595_v49  ;;  %v1732_v61 = vsub.f32 %v4591_v44, %v5568_v38 }
 0x1a9   : > { %1768 = vmatpush.msrb.mxu2 %v4469_v16  ;;  %1677 = vmatpush.msrb.mxu0 %v4475_v6  ;;  %v1709_v17 = vand.u32 4294901760, %v1708_v22  ;;  %v4624_v22 = vsel %vm1535_vm1, %v4504_v63, %v1534_v40  ;;  %v5569_v63 = vand.u32 4294901760, %v4572_v50 }
 0x1aa   : > { %1809 = vmatpush.msrb.mxu3 %v4475_v6  ;;  %v1720_v36 = vsub.f32 %v4528_v25, %v5564_v41  ;;  %v1546_v41 = vmul.f32 %v1542_v9, %v4624_v22  ;;  %v1738_v38 = vsub.f32 %v4610_v39, %v5570_v51  ;;  %v1733_v51 = vand.u32 4294901760, %v1732_v61 }
 0x1ab   : > { %1771 = vmatpush.msrb.mxu2 %v4490_v18  ;;  %1679 = vmatpush.msrb.mxu0 %v4497_v29  ;;  %v1951_v7 = vsub.f32 %v4572_v50, %v5569_v63  ;;  %v5580_v63 = vand.u32 4294901760, %v4613_v14  ;;  %v5582_v9 = vand.u32 4294901760, %v4619_v4  ;;  %v1968_v1 = vand.u32 4294901760, %v4650_v48 }
 0x1ac   : > { %1811 = vmatpush.msrb.mxu3 %v4497_v29  ;;  %1457 = vmatmul.f32.vlgmr.msra.gmra.mxu0 %v4332_v62  ;;  %v1562_v62 = vmul.f32 %v1558_v45, %v4585_v28  ;;  %v1662_v45 = vsel %vm758_vm9, %v1660_v23, 0  ;;  %v1721_v40 = vand.u32 4294901760, %v1720_v36  ;;  %v4645_v23 = vsub.f32 %v1545_v58, %v4602_v47 }
 0x1ad   : > { %1774 = vmatpush.msrb.mxu2 %v4528_v25  ;;  %1681 = vmatpush.msrb.mxu0 %v4542_v24  ;;  %v1727_v58 = vand.u32 4294901760, %v1726_v0  ;;  %v4679_v36 = vand.u32 4294901760, %v1546_v41  ;;  %v1744_v60 = vsub.f32 %v4619_v4, %v5582_v9  ;;  %v1739_v61 = vand.u32 4294901760, %v1738_v38 }
 0x1ae   : > { %1381 = vmatmul.f32.vlgmr.msrb.gmra.mxu1 %v4316_v8  ;;  %1813 = vmatpush.msrb.mxu3 %v4542_v24 }
 0x1af   : > { %1710 = vmatpush.msrb.mxu1 %v1709_v17  ;;  %1777 = vmatpush.msrb.mxu2 %v4548_v15  ;;  %v1945_v17 = vsub.f32 %v4551_v20, %v5565_v2  ;;  %v4658_v2 = vand.u32 4294901760, %v1562_v62  ;;  %v1745_v38 = vand.u32 4294901760, %v1744_v60 }
 0x1b0   : > { %1683 = vmatpush.msrb.mxu0 %v4564_v5  ;;  %1815 = vmatpush.msrb.mxu3 %v4564_v5 }
 0x1b1   : > { %1716 = vmatpush.msrb.mxu1 %v1715_v42  ;;  %1780 = vmatpush.msrb.mxu2 %v4591_v44  ;;  %v4656_v42 = vand.u32 4294901760, %v1662_v45  ;;  %v1946_v0 = vand.u32 4294901760, %v1945_v17  ;;  %v4690_v17 = vsub.f32 %v1562_v62, %v4658_v2 }
 0x1b2   : > { %1505 = vmatmul.f32.vlgmr.msra.gmra.mxu2 %v4316_v8  ;;  %1685 = vmatpush.msrb.mxu0 %v4576_v35 }
 0x1b3   : > { %1722 = vmatpush.msrb.mxu1 %v1721_v40  ;;  %1783 = vmatpush.msrb.mxu2 %v4610_v39  ;;  %v4672_v40 = vsub.f32 %v1578_v37, %v4635_v43  ;;  %v1957_v37 = vsub.f32 %v4613_v14, %v5580_v63  ;;  %v5583_v63 = vand.u32 4294901760, %v4633_v32 }
 0x1b4   : > { %1817 = vmatpush.msrb.mxu3 %v4576_v35  ;;  %1687 = vmatpush.msrb.mxu0 %v4602_v47 }
 0x1b5   : > { %1527 = vmatmul.f32.vlgmr.msra.gmra.mxu3 %v4316_v8  ;;  %1728 = vmatpush.msrb.mxu1 %v1727_v58  ;;  %v4687_v8 = vsub.f32 %v1662_v45, %v4656_v42  ;;  %v5581_v58 = vand.u32 4294901760, %v4469_v16  ;;  %v1952_v45 = vand.u32 4294901760, %v1951_v7  ;;  %v1963_v62 = vsub.f32 %v4633_v32, %v5583_v63 }
 0x1b6   : > { %1786 = vmatpush.msrb.mxu2 %v4619_v4  ;;  %1819 = vmatpush.msrb.mxu3 %v4602_v47  ;;  %v5584_v16 = vand.u32 4294901760, %v4490_v18  ;;  %v1958_v7 = vand.u32 4294901760, %v1957_v37  ;;  %v5586_v18 = vand.u32 4294901760, %v4528_v25  ;;  %v5587_v37 = vand.u32 4294901760, %v4548_v15 }
 0x1b7   : > { %1838 = vmatpush.msra.mxu0 %v5581_v58  ;;  %1481 = vmatmul.f32.vlgmr.msra.gmra.mxu1 %v4355_v52  ;;  %v1974_v58 = vand.u32 4294901760, %v4672_v40  ;;  %v4710_v52 = vsub.f32 %v1546_v41, %v4679_v36  ;;  %v4714_v63 = vand.u32 4294901760, %v4687_v8  ;;  %v1964_v41 = vand.u32 4294901760, %v1963_v62 }
 0x1b8   : > { %1947 = vmatpush.msra.mxu3 %v1946_v0  ;;  %1789 = vmatpush.msrb.mxu2 %v4645_v23  ;;  %v5585_v0 = vand.u32 4294901760, %v4645_v23  ;;  %v5588_v62 = vand.u32 4294901760, %v4591_v44 }
 0x1b9   : > { %1734 = vmatpush.msrb.mxu1 %v1733_v51  ;;  %1842 = vmatpush.msra.mxu0 %v5584_v16  ;;  %v1969_v51 = vsub.f32 %v4650_v48, %v1968_v1  ;;  %v1980_v16 = vand.u32 4294901760, %v4690_v17  ;;  %v1975_v25 = vsub.f32 %v4672_v40, %v1974_v58  ;;  %v1691_v60 = vsub.f32 %v4687_v8, %v4714_v63 }
 0x1ba   : > { %v1750_v9 = vsub.f32 %v4645_v23, %v5585_v0  ;;  %1910 = vmatpush.msra.mxu2 %v4515_v53  ;;  %1953 = vmatpush.msra.mxu3 %v1952_v45 }
 0x1bb   : > { %1740 = vmatpush.msrb.mxu1 %v1739_v61  ;;  %1846 = vmatpush.msra.mxu0 %v5586_v18  ;;  %v1986_v61 = vand.u32 4294901760, %v4710_v52  ;;  %v1970_v0 = vand.u32 4294901760, %v1969_v51  ;;  %v1981_v15 = vsub.f32 %v4690_v17, %v1980_v16  ;;  %v4743_v44 = vand.u32 4294901760, %v1691_v60 }
 0x1bc   : > { %1912 = vmatpush.msra.mxu2 %v4507_v31  ;;  %1959 = vmatpush.msra.mxu3 %v1958_v7  ;;  %v1751_v45 = vand.u32 4294901760, %v1750_v9  ;;  %v5589_v9 = vand.u32 4294901760, %v4610_v39  ;;  %v1976_v7 = vand.u32 4294901760, %v1975_v25  ;;  %v2211_v39 = vpop.permute.xlu0 %2210  ;;  %v5591_v51 = vand.u32 4294901760, %v4645_v23 }
 0x1bd   : > { %1746 = vmatpush.msrb.mxu1 %v1745_v38  ;;  %1850 = vmatpush.msra.mxu0 %v5587_v37  ;;  %v1987_v18 = vsub.f32 %v4710_v52, %v1986_v61  ;;  %v5590_v38 = vand.u32 4294901760, %v4619_v4  ;;  %v2218_v4 = vld [vmem:[#allocation7 + $0x27] ss:$8 sm:$0x3]  ;;  %v5592_v37 = vand.u32 4294901760, %v4551_v20  ;;  %v5593_v25 = vand.u32 4294901760, %v4572_v50 }
 0x1be   : > { %1914 = vmatpush.msra.mxu2 %v4574_v56  ;;  %1965 = vmatpush.msra.mxu3 %v1964_v41  ;;  %v4764_v41 = vld [vmem:[#allocation7 + $0x26] ss:$8 sm:$0x3]  ;;  %v2220_v23 = vperm.slane %v2218_v4, 0 }
 0x1bf   : > { %1752 = vmatpush.msrb.mxu1 %v1751_v45  ;;  %1854 = vmatpush.msra.mxu0 %v5588_v62  ;;  %v4779_v62 = vld [vmem:[#allocation7 + $0x24] ss:$8 sm:$0x3] }
 0x1c0   : > { %1916 = vmatpush.msra.mxu2 %v4598_v19  ;;  %1971 = vmatpush.msra.mxu3 %v1970_v0 }
 0x1c1   : > { %1881 = vmatpush.msra.mxu1 %v4428_v12  ;;  %1858 = vmatpush.msra.mxu0 %v5589_v9  ;;  %v1982_v12 = vand.u32 4294901760, %v1981_v15  ;;  %v4788_v15 = vld [vmem:[#allocation7 + $0x23] ss:$8 sm:$0x3]  ;;  %v2186_v9 = vperm.slane %v4779_v62, 0 }
 0x1c2   : > { %1918 = vmatpush.msra.mxu2 %v4595_v49  ;;  %1977 = vmatpush.msra.mxu3 %v1976_v7  ;;  %v4800_v7 = vld [vmem:[#allocation7 + $0x22] ss:$8 sm:$0x3] }
 0x1c3   : > { %1883 = vmatpush.msra.mxu1 %v4446_v46  ;;  %1792 = vmatmul.f32.vlgmr.msrb.gmra.mxu2 %v4687_v8  ;;  %v1988_v46 = vand.u32 4294901760, %v1987_v18  ;;  %v2177_v18 = vperm.slane %v4788_v15, 0 }
 0x1c4   : > { %1862 = vmatpush.msra.mxu0 %v5590_v38  ;;  %1920 = vmatpush.msra.mxu2 %v4635_v43 }
 0x1c5   : > { %1885 = vmatpush.msra.mxu1 %v4475_v6  ;;  %1983 = vmatpush.msra.mxu3 %v1982_v12  ;;  %v2213_v6 = vpop.permute.xlu1 %2212 }
 0x1c6   : > { %1693 = vmatmul.f32.vlgmr.msrb.gmra.mxu0 %v4743_v44  ;;  %1823 = vmatmul.f32.vlgmr.msrb.gmra.mxu3 %v4714_v63  ;;  %v2216_v45 = vsel %vm2214_vm2, %v2213_v6, %v2211_v39 }
 0x1c7   : > { %1866 = vmatpush.msra.mxu0 %v5591_v51  ;;  %1887 = vmatpush.msra.mxu1 %v4497_v29  ;;  %v2193_v29 = vld [vmem:[#allocation7 + $0x25] ss:$8 sm:$0x3]  ;;  %v2224_v0 = vmul.f32 %v2220_v23, %v2216_v45  ;;  %v2168_v51 = vperm.slane %v4800_v7, 0  ;;  %v2169_v45 = vperm.slane %v4800_v7, 1 }
 0x1c8   : > { %1922 = vmatpush.msra.mxu2 %v4658_v2  ;;  %1989 = vmatpush.msra.mxu3 %v1988_v46  ;;  %v2195_v60 = vperm.slane %v2193_v29, 0  ;;  %v2190_v46 = vmul.f32 %v2186_v9, %v4624_v22 }
 0x1c9   : > { %1754 = vmatmul.f32.vlgmr.msrb.gmra.mxu1 %v4656_v42  ;;  %2005 = vmatpush.msrb.mxu0 %v4551_v20  ;;  %v4781_v20 = vpop.permute.xlu0 %2780  ;;  %v4803_v12 = vand.u32 4294901760, %v2224_v0 }
 0x1ca   : > { %2118 = vmatpush.msrb.mxu3 %v4515_v53  ;;  %1889 = vmatpush.msra.mxu1 %v4542_v24  ;;  %v2204_v24 = vperm.slane %v4764_v41, 0 }
 0x1cb   : > { %1924 = vmatpush.msra.mxu2 %v4679_v36  ;;  %2008 = vmatpush.msrb.mxu0 %v4572_v50 }
 0x1cc   : > { %2120 = vmatpush.msrb.mxu3 %v4507_v31  ;;  %1891 = vmatpush.msra.mxu1 %v4564_v5  ;;  %v5594_v5 = vand.u32 4294901760, %v4613_v14  ;;  %v2208_v50 = vmul.f32 %v2204_v24, %v4502_v27  ;;  %v2196_v27 = vperm.slane %v2193_v29, 1  ;;  %v2141_v29 = vpop.permute.xlu2 %2140  ;;  %v2178_v24 = vperm.slane %v4788_v15, 1 }
 0x1cd   : > { %2075 = vmatpush.msrb.mxu2 %v5592_v37  ;;  %2011 = vmatpush.msrb.mxu0 %v4613_v14  ;;  %v5595_v14 = vand.u32 4294901760, %v4633_v32 }
 0x1ce   : > { %2122 = vmatpush.msrb.mxu3 %v4574_v56  ;;  %1893 = vmatpush.msra.mxu1 %v4576_v35  ;;  %v2199_v35 = vmul.f32 %v2195_v60, %v4522_v55  ;;  %v2215_v55 = vsel %vm2214_vm2, %v2211_v39, %v2213_v6  ;;  %v4813_v38 = vand.u32 4294901760, %v2208_v50  ;;  %v4827_v39 = vld [vmem:[#allocation7 + $0x20] ss:$8 sm:$0x3]  ;;  %v2182_v9 = vmul.f32 %v2178_v24, %v4383_v30 }
 0x1cf   : > { %2079 = vmatpush.msrb.mxu2 %v5593_v25  ;;  %1868 = vmatmul.f32.vlgmr.msra.gmra.mxu0 %v4656_v42  ;;  %v2150_v23 = vperm.slane %v4827_v39, 0 }
 0x1d0   : > { %2014 = vmatpush.msrb.mxu0 %v4633_v32  ;;  %2124 = vmatpush.msrb.mxu3 %v4598_v19  ;;  %v2205_v32 = vperm.slane %v4764_v41, 1  ;;  %v4840_v41 = vand.u32 4294901760, %v2190_v46 }
 0x1d1   : > { %2083 = vmatpush.msrb.mxu2 %v5594_v5  ;;  %1895 = vmatpush.msra.mxu1 %v4602_v47  ;;  %v2221_v47 = vperm.slane %v2218_v4, 1  ;;  %v4819_v4 = vand.u32 4294901760, %v2199_v35  ;;  %v4834_v6 = vpop.permute.xlu0 %2142 }
 0x1d2   : > { %1897 = vmatmul.f32.vlgmr.msra.gmra.mxu1 %v4656_v42  ;;  %2017 = vmatpush.msrb.mxu0 %v4650_v48  ;;  %v4825_v48 = vsub.f32 %v2224_v0, %v4803_v12 }
 0x1d3   : > { %2042 = vmatpush.msrb.mxu1 %v4515_v53  ;;  %2087 = vmatpush.msrb.mxu2 %v5595_v14  ;;  %v2157_v53 = vld [vmem:[#allocation7 + $0x21] ss:$8 sm:$0x3] }
 0x1d4   : > { %2126 = vmatpush.msrb.mxu3 %v4595_v49  ;;  %2020 = vmatpush.msrb.mxu0 %v4672_v40  ;;  %v2159_v22 = vperm.slane %v2157_v53, 0  ;;  %v2160_v40 = vperm.slane %v2157_v53, 1 }
 0x1d5   : > { %2044 = vmatpush.msrb.mxu1 %v4507_v31  ;;  %2091 = vmatpush.msrb.mxu2 %v1968_v1  ;;  %v2181_v1 = vmul.f32 %v2177_v18, %v4442_v3  ;;  %v2225_v31 = vmul.f32 %v2221_v47, %v2215_v55  ;;  %v2209_v3 = vmul.f32 %v2205_v32, %v4585_v28  ;;  %v2227_v18 = vld [vmem:[#allocation5 + $0x10] sm:$0xff]  ;;  %v2151_v47 = vperm.slane %v4827_v39, 1 }
 0x1d6   : > { %2128 = vmatpush.msrb.mxu3 %v4635_v43  ;;  %1930 = vmatmul.f32.vlgmr.msra.gmra.mxu2 %v4743_v44  ;;  %v2200_v44 = vmul.f32 %v2196_v27, %v4434_v26  ;;  %v4846_v26 = vsub.f32 %v2208_v50, %v4813_v38  ;;  %v4853_v28 = vsub.f32 %v2199_v35, %v4819_v4 }
 0x1d7   : > { %2023 = vmatpush.msrb.mxu0 %v4690_v17  ;;  %2046 = vmatpush.msrb.mxu1 %v4574_v56  ;;  %v2187_v56 = vperm.slane %v4779_v62, 1  ;;  %v2274_v17 = vand.u32 4294901760, %v4825_v48  ;;  %v2163_v37 = vmul.f32 %v2159_v22, %v4396_v11  ;;  %v4873_v60 = vand.u32 4294901760, %v2209_v3 }
 0x1d8   : > { %2095 = vmatpush.msrb.mxu2 %v1974_v58  ;;  %2130 = vmatpush.msrb.mxu3 %v4658_v2  ;;  %v2172_v58 = vmul.f32 %v2168_v51, %v4512_v34  ;;  %v2145_v34 = vsel %vm2144_vm3, %v2141_v29, %v4834_v6  ;;  %v4868_v25 = vand.u32 4294901760, %v2200_v44  ;;  %v4879_v11 = vsub.f32 %v2190_v46, %v4840_v41 }
 0x1d9   : > { %1991 = vmatmul.f32.vlgmr.msra.gmra.mxu3 %v4656_v42  ;;  %2026 = vmatpush.msrb.mxu0 %v4710_v52  ;;  %v2191_v62 = vmul.f32 %v2187_v56, %v4534_v21  ;;  %v4883_v0 = vmul.f32 %v2160_v40, %v4425_v10  ;;  %v2286_v21 = vand.u32 4294901760, %v4853_v28  ;;  %v2275_v10 = vsub.f32 %v4825_v48, %v2274_v17 }
 0x1da   : > { %2048 = vmatpush.msrb.mxu1 %v4598_v19  ;;  %2099 = vmatpush.msrb.mxu2 %v1980_v16  ;;  %v4855_v19 = vand.u32 4294901760, %v2181_v1  ;;  %v4858_v16 = vand.u32 4294901760, %v2225_v31  ;;  %v4885_v52 = vand.u32 4294901760, %v2172_v58  ;;  %v4901_v50 = vand.u32 4294901760, %v2163_v37 }
 0x1db   : > { %2132 = vmatpush.msrb.mxu3 %v4679_v36  ;;  %2240 = vmatpush.msra.mxu0 %v4803_v12  ;;  %v4906_v35 = vsub.f32 %v2200_v44, %v4868_v25  ;;  %v4911_v14 = vsub.f32 %v2209_v3, %v4873_v60  ;;  %v4913_v7 = vand.u32 4294901760, %v2191_v62  ;;  %v2146_v55 = vsel %vm2144_vm3, %v4834_v6, %v2141_v29 }
 0x1dc   : > { %2050 = vmatpush.msrb.mxu1 %v4595_v49  ;;  %2103 = vmatpush.msrb.mxu2 %v1986_v61  ;;  %v2280_v49 = vand.u32 4294901760, %v4846_v26  ;;  %v2154_v61 = vmul.f32 %v2150_v23, %v2145_v34  ;;  %v4891_v5 = vsub.f32 %v2225_v31, %v4858_v16  ;;  %v4899_v15 = vsub.f32 %v2181_v1, %v4855_v19 }
 0x1dd   : > { %2372 = vmatpush.msra.mxu3 %v4803_v12  ;;  %2242 = vmatpush.msra.mxu0 %v4813_v38  ;;  %v2276_v53 = vand.u32 4294901760, %v2275_v10  ;;  %v4941_v51 = vand.u32 4294901760, %v2182_v9  ;;  %v4946_v1 = vsub.f32 %v2163_v37, %v4901_v50  ;;  %v2229_v31 = vsel %vm758_vm9, %v2227_v18, 0 }
 0x1de   : > { %2335 = vmatpush.msra.mxu2 %v4825_v48  ;;  %2052 = vmatpush.msrb.mxu1 %v4635_v43  ;;  %v2173_v43 = vmul.f32 %v2169_v45, %v4465_v13  ;;  %v2281_v30 = vsub.f32 %v4846_v26, %v2280_v49  ;;  %v2292_v13 = vand.u32 4294901760, %v4879_v11  ;;  %v4922_v27 = vand.u32 4294901760, %v2154_v61 }
 0x1df   : > { %2374 = vmatpush.msra.mxu3 %v4813_v38  ;;  %2105 = vmatmul.f32.vlgmr.msrb.gmra.mxu2 %v4656_v42  ;;  %v2298_v32 = vand.u32 4294901760, %v4899_v15  ;;  %v4950_v39 = vsub.f32 %v2191_v62, %v4913_v7  ;;  %v2155_v44 = vmul.f32 %v2151_v47, %v2146_v55  ;;  %v2523_v29 = vand.u32 4294901760, %v4906_v35 }
 0x1e0   : > { %2244 = vmatpush.msra.mxu0 %v4819_v4  ;;  %2338 = vmatpush.msra.mxu2 %v4846_v26  ;;  %v4939_v46 = vand.u32 4294901760, %v2173_v43  ;;  %v2293_v22 = vsub.f32 %v4879_v11, %v2292_v13  ;;  %v4960_v3 = vsub.f32 %v2154_v61, %v4922_v27  ;;  %v4971_v23 = vand.u32 4294901760, %v2229_v31 }
 0x1e1   : > { %2376 = vmatpush.msra.mxu3 %v4819_v4  ;;  %2054 = vmatpush.msrb.mxu1 %v4658_v2  ;;  %v2287_v2 = vsub.f32 %v4853_v28, %v2286_v21  ;;  %v4974_v34 = vand.u32 4294901760, %v4883_v0  ;;  %v4977_v37 = vsub.f32 %v2182_v9, %v4941_v51  ;;  %v2310_v45 = vand.u32 4294901760, %v4946_v1 }
 0x1e2   : > { %2029 = vmatmul.f32.vlgmr.msrb.gmra.mxu0 %v4687_v8  ;;  %2134 = vmatmul.f32.vlgmr.msrb.gmra.mxu3 %v4656_v42  ;;  %v4930_v42 = vsub.f32 %v2172_v58, %v4885_v52  ;;  %v2511_v8 = vand.u32 4294901760, %v4891_v5  ;;  %v2299_v58 = vsub.f32 %v4899_v15, %v2298_v32  ;;  %v2294_v24 = vand.u32 4294901760, %v2293_v22 }
 0x1e3   : > { %2246 = vmatpush.msra.mxu0 %v4840_v41  ;;  %2341 = vmatpush.msra.mxu2 %v4853_v28  ;;  %v2288_v6 = vand.u32 4294901760, %v2287_v2  ;;  %v2529_v61 = vand.u32 4294901760, %v4950_v39  ;;  %v4988_v10 = vsub.f32 %v2173_v43, %v4939_v46  ;;  %v4990_v9 = vand.u32 4294901760, %v2155_v44 }
 0x1e4   : > { %2378 = vmatpush.msra.mxu3 %v4840_v41  ;;  %2056 = vmatpush.msrb.mxu1 %v4679_v36  ;;  %v2282_v36 = vand.u32 4294901760, %v2281_v30  ;;  %v2304_v56 = vand.u32 4294901760, %v4930_v42  ;;  %v2512_v40 = vsub.f32 %v4891_v5, %v2511_v8  ;;  %v2316_v18 = vand.u32 4294901760, %v4960_v3 }
 0x1e5   : > { %2060 = vmatmul.f32.vlgmr.msrb.gmra.mxu1 %v4714_v63  ;;  %2248 = vmatpush.msra.mxu0 %v4855_v19  ;;  %v2517_v63 = vand.u32 4294901760, %v4911_v14  ;;  %v2300_v2 = vand.u32 4294901760, %v2299_v58  ;;  %v2524_v43 = vsub.f32 %v4906_v35, %v2523_v29  ;;  %v5003_v55 = vsub.f32 %v2229_v31, %v4971_v23 }
 0x1e6   : > { %2277 = vmatpush.msra.mxu1 %v2276_v53  ;;  %2344 = vmatpush.msra.mxu2 %v4879_v11  ;;  %v2305_v30 = vsub.f32 %v4930_v42, %v2304_v56  ;;  %v2513_v47 = vand.u32 4294901760, %v2512_v40  ;;  %v5007_v53 = vsub.f32 %v4883_v0, %v4974_v34  ;;  %v2311_v22 = vsub.f32 %v4946_v1, %v2310_v45 }
 0x1e7   : > { %2380 = vmatpush.msra.mxu3 %v4855_v19  ;;  %2250 = vmatpush.msra.mxu0 %v4885_v52  ;;  %v2518_v62 = vsub.f32 %v4911_v14, %v2517_v63  ;;  %v2530_v0 = vsub.f32 %v4950_v39, %v2529_v61  ;;  %v2541_v40 = vand.u32 4294901760, %v4988_v10  ;;  %v5029_v58 = vsub.f32 %v2155_v44, %v4990_v9 }
 0x1e8   : > { %2283 = vmatpush.msra.mxu1 %v2282_v36  ;;  %2347 = vmatpush.msra.mxu2 %v4899_v15  ;;  %v5009_v36 = vpop.permute.xlu1 %2805  ;;  %v2306_v48 = vand.u32 4294901760, %v2305_v30  ;;  %v2312_v26 = vand.u32 4294901760, %v2311_v22  ;;  %v2547_v30 = vand.u32 4294901760, %v5007_v53 }
 0x1e9   : > { %2382 = vmatpush.msra.mxu3 %v4885_v52  ;;  %2252 = vmatpush.msra.mxu0 %v4901_v50  ;;  %v2519_v31 = vand.u32 4294901760, %v2518_v62  ;;  %v5033_v62 = vand.u32 4294901760, %v5003_v55  ;;  %v2531_v44 = vand.u32 4294901760, %v2530_v0  ;;  %v2542_v28 = vsub.f32 %v4988_v10, %v2541_v40  ;;  %v5096_v0 = vld [vmem:[#allocation7 + $0x35] ss:$8 sm:$0x3] }
 0x1ea   : > { %2289 = vmatpush.msra.mxu1 %v2288_v6  ;;  %2350 = vmatpush.msra.mxu2 %v4930_v42  ;;  %v2535_v6 = vand.u32 4294901760, %v4977_v37  ;;  %v2548_v11 = vsub.f32 %v5007_v53, %v2547_v30  ;;  %v5075_v42 = vpop.permute.xlu0 %2732 }
 0x1eb   : > { %2384 = vmatpush.msra.mxu3 %v4901_v50  ;;  %2254 = vmatpush.msra.mxu0 %v4922_v27 }
 0x1ec   : > { %2295 = vmatpush.msra.mxu1 %v2294_v24  ;;  %2353 = vmatpush.msra.mxu2 %v4946_v1  ;;  %v2525_v24 = vand.u32 4294901760, %v2524_v43  ;;  %v2553_v43 = vand.u32 4294901760, %v5029_v58 }
 0x1ed   : > { %2386 = vmatpush.msra.mxu3 %v4922_v27  ;;  %2405 = vmatpush.msrb.mxu0 %v2274_v17  ;;  %v2317_v17 = vsub.f32 %v4960_v3, %v2316_v18 }
 0x1ee   : > { %2301 = vmatpush.msra.mxu1 %v2300_v2  ;;  %2356 = vmatpush.msra.mxu2 %v4960_v3 }
 0x1ef   : > { %2514 = vmatpush.msrb.mxu3 %v2513_v47  ;;  %2409 = vmatpush.msrb.mxu0 %v2280_v49  ;;  %v2536_v49 = vsub.f32 %v4977_v37, %v2535_v6  ;;  %v5042_v47 = vpop.permute.xlu2 %2764  ;;  %v2318_v2 = vand.u32 4294901760, %v2317_v17 }
 0x1f0   : > { %2477 = vmatpush.msrb.mxu2 %v4858_v16  ;;  %2307 = vmatpush.msra.mxu1 %v2306_v48  ;;  %v5107_v48 = vld [vmem:[#allocation7 + $0x31] ss:$8 sm:$0x3] }
 0x1f1   : > { %2520 = vmatpush.msrb.mxu3 %v2519_v31  ;;  %2413 = vmatpush.msrb.mxu0 %v2286_v21  ;;  %v2258_v21 = vsub.f32 %v5003_v55, %v5033_v62  ;;  %v2537_v22 = vand.u32 4294901760, %v2536_v49  ;;  %v2543_v31 = vand.u32 4294901760, %v2542_v28  ;;  %v5114_v49 = vld [vmem:[#allocation7 + $0x34] ss:$8 sm:$0x3] }
 0x1f2   : > { %2479 = vmatpush.msrb.mxu2 %v4873_v60  ;;  %2313 = vmatpush.msra.mxu1 %v2312_v26  ;;  %v2790_v26 = vperm.slane %v5096_v0, 0 }
 0x1f3   : > { %2526 = vmatpush.msrb.mxu3 %v2525_v24  ;;  %2417 = vmatpush.msrb.mxu0 %v2292_v13  ;;  %v5060_v13 = vpop.permute.xlu1 %2748  ;;  %v5066_v15 = vand.u32 4294901760, %v2258_v21  ;;  %v5130_v21 = vld [vmem:[#allocation7 + $0x33] ss:$8 sm:$0x3] }
 0x1f4   : > { %2481 = vmatpush.msrb.mxu2 %v4868_v25  ;;  %2319 = vmatpush.msra.mxu1 %v2318_v2  ;;  %v792_v1 = vpop.f32.mrf.mxu0 }
 0x1f5   : > { %2532 = vmatpush.msrb.mxu3 %v2531_v44  ;;  %2421 = vmatpush.msrb.mxu0 %v2298_v32  ;;  %v2554_v32 = vsub.f32 %v5029_v58, %v2553_v43  ;;  %v5116_v44 = vpop.permute.xlu0 %2766 }
 0x1f6   : > { %2448 = vmatpush.msrb.mxu1 %v4803_v12  ;;  %2483 = vmatpush.msrb.mxu2 %v4913_v7  ;;  %v2549_v12 = vand.u32 4294901760, %v2548_v11 }
 0x1f7   : > { %2538 = vmatpush.msrb.mxu3 %v2537_v22  ;;  %2425 = vmatpush.msrb.mxu0 %v2304_v56  ;;  %v2808_v56 = vpop.permute.xlu2 %2807 }
 0x1f8   : > { %2450 = vmatpush.msrb.mxu1 %v4813_v38  ;;  %2485 = vmatpush.msrb.mxu2 %v4941_v51  ;;  %v2555_v38 = vand.u32 4294901760, %v2554_v32 }
 0x1f9   : > { %2544 = vmatpush.msrb.mxu3 %v2543_v31  ;;  %2359 = vmatmul.f32.vlgmr.msra.gmra.mxu2 %v5003_v55 }
 0x1fa   : > { %2429 = vmatpush.msrb.mxu0 %v2310_v45  ;;  %2452 = vmatpush.msrb.mxu1 %v4819_v4  ;;  %v2797_v45 = vld [vmem:[#allocation7 + $0x36] ss:$8 sm:$0x3]  ;;  %v5084_v4 = vld [vmem:[#allocation7 + $0x37] ss:$8 sm:$0x3] }
 0x1fb   : > { %2487 = vmatpush.msrb.mxu2 %v4939_v46  ;;  %2550 = vmatpush.msrb.mxu3 %v2549_v12  ;;  %v2799_v3 = vperm.slane %v2797_v45, 0  ;;  %v2800_v17 = vperm.slane %v2797_v45, 1  ;;  %v2816_v28 = vperm.slane %v5084_v4, 1  ;;  %v2727_v12 = vperm.slane %v5107_v48, 1 }
 0x1fc   : > { %2260 = vmatmul.f32.vlgmr.msra.gmra.mxu0 %v5066_v15  ;;  %2390 = vmatmul.f32.vlgmr.msra.gmra.mxu3 %v5033_v62 }
 0x1fd   : > { %2433 = vmatpush.msrb.mxu0 %v2316_v18  ;;  %2454 = vmatpush.msrb.mxu1 %v4840_v41  ;;  %v5091_v18 = vpop.permute.xlu1 %2782  ;;  %v2815_v41 = vperm.slane %v5084_v4, 0  ;;  %v2803_v24 = vmul.f32 %v2799_v3, %v4053_v33  ;;  %v2726_v33 = vperm.slane %v5107_v48, 0  ;;  %v5135_v31 = vmul.f32 %v2800_v17, %v4123_v57 }
 0x1fe   : > { %2489 = vmatpush.msrb.mxu2 %v4974_v34  ;;  %2556 = vmatpush.msrb.mxu3 %v2555_v38  ;;  %v2769_v57 = vsel %vm2768_vm6, %v5042_v47, %v5116_v44  ;;  %v2775_v17 = vperm.slane %v5114_v49, 1 }
 0x1ff   : > { %2321 = vmatmul.f32.vlgmr.msra.gmra.mxu1 %v4971_v23  ;;  %2572 = vmatpush.msra.mxu0 %v4891_v5  ;;  %v5144_v32 = vand.u32 4294901760, %v2803_v24  ;;  %v5169_v4 = vmul.f32 %v2726_v33, %v4007_v59  ;;  %v5172_v3 = vand.u32 4294901760, %v5135_v31 }
 0x200   : > { %2685 = vmatpush.msra.mxu3 %v4858_v16  ;;  %2456 = vmatpush.msrb.mxu1 %v4855_v19  ;;  %v2811_v19 = vsel %vm2809_vm4, %v2808_v56, %v5009_v36 }
 0x201   : > { %2491 = vmatpush.msrb.mxu2 %v4990_v9  ;;  %2575 = vmatpush.msra.mxu0 %v4911_v14  ;;  %v2819_v14 = vmul.f32 %v2815_v41, %v2811_v19  ;;  %v2791_v41 = vperm.slane %v5096_v0, 1 }
 0x202   : > { %2687 = vmatpush.msra.mxu3 %v4873_v60  ;;  %2458 = vmatpush.msrb.mxu1 %v4885_v52 }
 0x203   : > { %2642 = vmatpush.msra.mxu2 %v2511_v8  ;;  %2578 = vmatpush.msra.mxu0 %v4906_v35  ;;  %v853_v5 = vpop.f32.mrf.mxu1  ;;  %v922_v8 = vpop.f32.mrf.mxu3  ;;  %v2810_v35 = vsel %vm2809_vm4, %v5009_v36, %v2808_v56  ;;  %v5154_v38 = vand.u32 4294901760, %v2819_v14  ;;  %v2758_v56 = vperm.slane %v5130_v21, 0 }
 0x204   : > { %2689 = vmatpush.msra.mxu3 %v4868_v25  ;;  %2460 = vmatpush.msrb.mxu1 %v4901_v50  ;;  %v854_v52 = vadd.f32 %v853_v5, %v792_v1  ;;  %v891_v2 = vpop.f32.mrf.mxu2  ;;  %v2751_v50 = vpop.permute.xlu2 %2750  ;;  %v5157_v1 = vld [vmem:[#allocation7 + $0x32] ss:$8 sm:$0x3]  ;;  %v2820_v45 = vmul.f32 %v2816_v28, %v2810_v35 }
 0x205   : > { %2646 = vmatpush.msra.mxu2 %v2517_v63  ;;  %2435 = vmatmul.f32.vlgmr.msrb.gmra.mxu0 %v4971_v23  ;;  %v2786_v63 = vsel %vm2784_vm5, %v5091_v18, %v4781_v20  ;;  %v2742_v59 = vperm.slane %v5157_v1, 0  ;;  %v5190_v0 = vsub.f32 %v2819_v14, %v5154_v38 }
 0x206   : > { %2581 = vmatpush.msra.mxu0 %v4950_v39  ;;  %2691 = vmatpush.msra.mxu3 %v4913_v7  ;;  %v892_v22 = vadd.f32 %v891_v2, %v854_v52  ;;  %v2735_v39 = vpop.permute.xlu1 %2734  ;;  %v5201_v5 = vand.u32 4294901760, %v2820_v45 }
 0x207   : > { %2650 = vmatpush.msra.mxu2 %v2523_v29  ;;  %2462 = vmatpush.msrb.mxu1 %v4922_v27  ;;  %v967_v11 = vpop.f32.mrf.mxu0  ;;  %v2774_v29 = vperm.slane %v5114_v49, 0  ;;  %v2794_v27 = vmul.f32 %v2790_v26, %v2786_v63  ;;  %v5209_v26 = vpop.permute.xlu0 %2709 }
 0x208   : > { %2464 = vmatmul.f32.vlgmr.msrb.gmra.mxu1 %v4971_v23  ;;  %2584 = vmatpush.msra.mxu0 %v4977_v37  ;;  %v923_v36 = vadd.f32 %v922_v8, %v892_v22  ;;  %v2759_v8 = vperm.slane %v5130_v21, 1  ;;  %v5238_v21 = vsub.f32 %v2820_v45, %v5201_v5  ;;  %v2743_v22 = vperm.slane %v5157_v1, 1 }
 0x209   : > { %2609 = vmatpush.msra.mxu1 %v4858_v16  ;;  %2654 = vmatpush.msra.mxu2 %v2529_v61  ;;  %v2754_v16 = vsel %vm2752_vm7, %v2751_v50, %v5060_v13  ;;  %v2778_v19 = vmul.f32 %v2774_v29, %v2769_v57  ;;  %v5181_v37 = vand.u32 4294901760, %v2794_v27  ;;  %v5268_v1 = vand.u32 4294901760, %v5169_v4 }
 0x20a   : > { %2693 = vmatpush.msra.mxu3 %v4941_v51  ;;  %2587 = vmatpush.msra.mxu0 %v4988_v10  ;;  %v968_v61 = vadd.f32 %v967_v11, %v923_v36 }
 0x20b   : > { %2611 = vmatpush.msra.mxu1 %v4873_v60  ;;  %2658 = vmatpush.msra.mxu2 %v2535_v6  ;;  %v2785_v60 = vsel %vm2784_vm5, %v4781_v20, %v5091_v18  ;;  %v5187_v6 = vsub.f32 %v2803_v24, %v5144_v32  ;;  %v2737_v20 = vsel %vm2736_vm8, %v5075_v42, %v2735_v39  ;;  %v5196_v18 = vld [vmem:[#allocation7 + $0x30] ss:$8 sm:$0x3]  ;;  %v5216_v52 = vand.u32 4294901760, %v2778_v19 }
 0x20c   : > { %2695 = vmatpush.msra.mxu3 %v4939_v46  ;;  %2497 = vmatmul.f32.vlgmr.msrb.gmra.mxu2 %v5066_v15  ;;  %v2762_v15 = vmul.f32 %v2758_v56, %v2754_v16  ;;  %v2770_v24 = vsel %vm2768_vm6, %v5116_v44, %v5042_v47  ;;  %v2795_v49 = vmul.f32 %v2791_v41, %v2785_v60  ;;  %v2708_v2 = vpop.permute.xlu2 %2707  ;;  %v2717_v63 = vperm.slane %v5196_v18, 0 }
 0x20d   : > { %2590 = vmatpush.msra.mxu0 %v5007_v53  ;;  %2613 = vmatpush.msra.mxu1 %v4868_v25  ;;  %v2746_v14 = vmul.f32 %v2742_v59, %v2737_v20  ;;  %v2712_v28 = vsel %vm2711_vm10, %v2708_v2, %v5209_v26  ;;  %v2875_v11 = vand.u32 4294901760, %v5187_v6  ;;  %v3106_v16 = vand.u32 4294901760, %v5238_v21  ;;  %v2822_v59 = vld [vmem:[#allocation5 + $0x18] sm:$0xff] }
 0x20e   : > { %2662 = vmatpush.msra.mxu2 %v2541_v40  ;;  %2697 = vmatpush.msra.mxu3 %v4974_v34  ;;  %v1090_v25 = vpop.f32.mrf.mxu3  ;;  %v2753_v40 = vsel %vm2752_vm7, %v5060_v13, %v2751_v50  ;;  %v5227_v13 = vsub.f32 %v2794_v27, %v5181_v37  ;;  %v5230_v53 = vand.u32 4294901760, %v2762_v15  ;;  %v5247_v27 = vand.u32 4294901760, %v2795_v49 }
 0x20f   : > { %2558 = vmatmul.f32.vlgmr.msrb.gmra.mxu3 %v4971_v23  ;;  %2593 = vmatpush.msra.mxu0 %v5029_v58  ;;  %v996_v10 = vpop.f32.mrf.mxu1  ;;  %v5245_v29 = vmul.f32 %v2759_v8, %v2753_v40  ;;  %v5255_v58 = vsub.f32 %v2778_v19, %v5216_v52  ;;  %v5262_v36 = vand.u32 4294901760, %v2746_v14  ;;  %v2721_v56 = vmul.f32 %v2717_v63, %v2712_v28 }
 0x210   : > { %2615 = vmatpush.msra.mxu1 %v4913_v7  ;;  %2666 = vmatpush.msra.mxu2 %v2547_v30  ;;  %v5221_v47 = vadd.f32 %v996_v10, %v968_v61  ;;  %v1029_v44 = vpop.f32.mrf.mxu2  ;;  %v2869_v7 = vand.u32 4294901760, %v5190_v0  ;;  %v2779_v30 = vmul.f32 %v2775_v17, %v2770_v24  ;;  %v2718_v61 = vperm.slane %v5196_v18, 1 }
 0x211   : > { %2699 = vmatpush.msra.mxu3 %v4990_v9  ;;  %2835 = vmatpush.msrb.mxu0 %v5154_v38  ;;  %v1128_v33 = vpop.f32.mrf.mxu0  ;;  %v1091_v50 = vadd.f32 %v1090_v25, %v1029_v44  ;;  %v5291_v41 = vand.u32 4294901760, %v5245_v29  ;;  %v5294_v19 = vsub.f32 %v2795_v49, %v5247_v27  ;;  %v2887_v60 = vand.u32 4294901760, %v5255_v58 }
 0x212   : > { %2617 = vmatpush.msra.mxu1 %v4941_v51  ;;  %2670 = vmatpush.msra.mxu2 %v2553_v43  ;;  %v2738_v51 = vsel %vm2736_vm8, %v2735_v39, %v5075_v42  ;;  %v5596_v43 = vld [vmem:[#allocation15_spill] sm:$0xff]  ;;  %v2881_v42 = vand.u32 4294901760, %v5227_v13  ;;  %v5270_v45 = vand.u32 4294901760, %v2779_v30  ;;  %v2870_v48 = vsub.f32 %v5190_v0, %v2869_v7 }
 0x213   : > { %2967 = vmatpush.msrb.mxu3 %v5154_v38  ;;  %2837 = vmatpush.msrb.mxu0 %v5144_v32  ;;  %v1129_v35 = vadd.f32 %v1128_v33, %v1091_v50  ;;  %v5260_v57 = vmul.f32 %v2727_v12, %v5596_v43  ;;  %v5278_v12 = vsub.f32 %v2762_v15, %v5230_v53  ;;  %v5305_v17 = vand.u32 4294901760, %v2721_v56 }
 0x214   : > { %2930 = vmatpush.msrb.mxu2 %v5190_v0  ;;  %2619 = vmatpush.msra.mxu1 %v4939_v46  ;;  %v5282_v46 = vsub.f32 %v5135_v31, %v5172_v3  ;;  %v5285_v39 = vmul.f32 %v2743_v22, %v2738_v51  ;;  %v2876_v31 = vsub.f32 %v5187_v6, %v2875_v11  ;;  %v2871_v54 = vand.u32 4294901760, %v2870_v48 }
 0x215   : > { %2969 = vmatpush.msrb.mxu3 %v5144_v32  ;;  %2672 = vmatmul.f32.vlgmr.msra.gmra.mxu2 %v4971_v23  ;;  %v5316_v18 = vsub.f32 %v2779_v30, %v5270_v45  ;;  %v2893_v25 = vand.u32 4294901760, %v5278_v12  ;;  %v5345_v63 = vsub.f32 %v2721_v56, %v5305_v17  ;;  %v3118_v30 = vand.u32 4294901760, %v5294_v19 }
 0x216   : > { %2839 = vmatpush.msrb.mxu0 %v5181_v37  ;;  %2933 = vmatpush.msrb.mxu2 %v5187_v6  ;;  %v5325_v24 = vand.u32 4294901760, %v5285_v39  ;;  %v3112_v10 = vand.u32 4294901760, %v5282_v46  ;;  %v5360_v51 = vsub.f32 %v5245_v29, %v5291_v41 }
 0x217   : > { %2971 = vmatpush.msrb.mxu3 %v5181_v37  ;;  %2621 = vmatpush.msra.mxu1 %v4974_v34  ;;  %v2713_v34 = vsel %vm2711_vm10, %v5209_v26, %v2708_v2  ;;  %v5331_v26 = vsub.f32 %v5169_v4, %v5268_v1  ;;  %v2894_v50 = vsub.f32 %v5278_v12, %v2893_v25 }
 0x218   : > { %2596 = vmatmul.f32.vlgmr.msra.gmra.mxu0 %v5003_v55  ;;  %2701 = vmatmul.f32.vlgmr.msra.gmra.mxu3 %v4971_v23  ;;  %v1233_v15 = vpop.f32.mrf.mxu3  ;;  %v2882_v23 = vsub.f32 %v5227_v13, %v2881_v42  ;;  %v5313_v55 = vsub.f32 %v2746_v14, %v5262_v36  ;;  %v2722_v44 = vmul.f32 %v2718_v61, %v2713_v34  ;;  %v3124_v61 = vand.u32 4294901760, %v5316_v18 }
 0x219   : > { %2841 = vmatpush.msrb.mxu0 %v5216_v52  ;;  %2936 = vmatpush.msrb.mxu2 %v5227_v13  ;;  %v1262_v20 = vpop.f32.mrf.mxu0  ;;  %v3107_v14 = vsub.f32 %v5238_v21, %v3106_v16  ;;  %v2905_v43 = vand.u32 4294901760, %v5331_v26  ;;  %v3113_v48 = vsub.f32 %v5282_v46, %v3112_v10 }
 0x21a   : > { %2973 = vmatpush.msrb.mxu3 %v5216_v52  ;;  %2623 = vmatpush.msra.mxu1 %v4990_v9  ;;  %v5322_v8 = vadd.f32 %v1262_v20, %v5221_v47  ;;  %v2824_v9 = vsel %vm758_vm9, %v2822_v59, 0  ;;  %v2877_v47 = vand.u32 4294901760, %v2876_v31  ;;  %v2883_v4 = vand.u32 4294901760, %v2882_v23 }
 0x21b   : > { %2627 = vmatmul.f32.vlgmr.msra.gmra.mxu1 %v5033_v62  ;;  %2843 = vmatpush.msrb.mxu0 %v5230_v53  ;;  %v1159_v40 = vpop.f32.mrf.mxu1  ;;  %v1204_v49 = vpop.f32.mrf.mxu2  ;;  %v2888_v62 = vsub.f32 %v5255_v58, %v2887_v60  ;;  %v2899_v33 = vand.u32 4294901760, %v5313_v55  ;;  %v5353_v28 = vand.u32 4294901760, %v2824_v9  ;;  %v5374_v59 = vsub.f32 %v5285_v39, %v5325_v24 }
 0x21c   : > { %2872 = vmatpush.msrb.mxu1 %v2871_v54  ;;  %2939 = vmatpush.msrb.mxu2 %v5255_v58  ;;  %v1160_v2 = vadd.f32 %v1159_v40, %v1129_v35  ;;  %v5356_v35 = vand.u32 4294901760, %v5260_v57  ;;  %v5376_v34 = vand.u32 4294901760, %v2722_v44  ;;  %v2911_v20 = vand.u32 4294901760, %v5345_v63 }
 0x21d   : > { %2975 = vmatpush.msrb.mxu3 %v5230_v53  ;;  %2845 = vmatpush.msrb.mxu0 %v5262_v36  ;;  %v2889_v56 = vand.u32 4294901760, %v2888_v62  ;;  %v2900_v23 = vsub.f32 %v5313_v55, %v2899_v33  ;;  %v2895_v54 = vand.u32 4294901760, %v2894_v50  ;;  %v3119_v39 = vsub.f32 %v5294_v19, %v3118_v30 }
 0x21e   : > { %2878 = vmatpush.msrb.mxu1 %v2877_v47  ;;  %2942 = vmatpush.msrb.mxu2 %v5278_v12  ;;  %v1205_v22 = vadd.f32 %v1204_v49, %v1160_v2  ;;  %v5389_v40 = vsub.f32 %v2824_v9, %v5353_v28  ;;  %v5393_v47 = vsub.f32 %v5260_v57, %v5356_v35  ;;  %v3130_v2 = vand.u32 4294901760, %v5360_v51 }
 0x21f   : > { %2977 = vmatpush.msrb.mxu3 %v5262_v36  ;;  %2847 = vmatpush.msrb.mxu0 %v5268_v1  ;;  %v2906_v62 = vsub.f32 %v5331_v26, %v2905_v43  ;;  %v3114_v9 = vand.u32 4294901760, %v3113_v48  ;;  %v3125_v57 = vsub.f32 %v5316_v18, %v3124_v61  ;;  %v2901_v0 = vand.u32 4294901760, %v2900_v23 }
 0x220   : > { %2884 = vmatpush.msrb.mxu1 %v2883_v4  ;;  %2945 = vmatpush.msrb.mxu2 %v5313_v55  ;;  %v5370_v31 = vadd.f32 %v1233_v15, %v1205_v22  ;;  %v1336_v29 = vpop.f32.mrf.mxu3  ;;  %v3108_v15 = vand.u32 4294901760, %v3107_v14  ;;  %v3136_v22 = vand.u32 4294901760, %v5374_v59  ;;  %v3120_v48 = vand.u32 4294901760, %v3119_v39 }
 0x221   : > { %2979 = vmatpush.msrb.mxu3 %v5268_v1  ;;  %2849 = vmatpush.msrb.mxu0 %v5305_v17  ;;  %v1360_v49 = vpop.f32.mrf.mxu0  ;;  %v2907_v6 = vand.u32 4294901760, %v2906_v62  ;;  %v3126_v23 = vand.u32 4294901760, %v3125_v57 }
 0x222   : > { %2890 = vmatpush.msrb.mxu1 %v2889_v56  ;;  %2948 = vmatpush.msrb.mxu2 %v5331_v26  ;;  %v5414_v56 = vsub.f32 %v2722_v44, %v5376_v34  ;;  %v3142_v44 = vand.u32 4294901760, %v5393_v47  ;;  %v3137_v13 = vsub.f32 %v5374_v59, %v3136_v22 }
 0x223   : > { %2981 = vmatpush.msrb.mxu3 %v5305_v17  ;;  %3000 = vmatpush.msra.mxu0 %v2869_v7  ;;  %v1288_v4 = vpop.f32.mrf.mxu1  ;;  %v1312_v14 = vpop.f32.mrf.mxu2  ;;  %v2912_v7 = vsub.f32 %v5345_v63, %v2911_v20 }
 0x224   : > { %2896 = vmatpush.msrb.mxu1 %v2895_v54  ;;  %v1289_v50 = vadd.f32 %v1288_v4, %v5322_v8  ;;  %2951 = vmatpush.msrb.mxu2 %v5345_v63  ;;  %v5418_v8 = vand.u32 4294901760, %v5389_v40  ;;  %v3148_v62 = vand.u32 4294901760, %v5414_v56  ;;  %v3138_v12 = vand.u32 4294901760, %v3137_v13 }
 0x225   : > { %3109 = vmatpush.msra.mxu3 %v3108_v15  ;;  %3004 = vmatpush.msra.mxu0 %v2875_v11  ;;  %v3131_v11 = vsub.f32 %v5360_v51, %v3130_v2  ;;  %v2913_v39 = vand.u32 4294901760, %v2912_v7 }
 0x226   : > { %3072 = vmatpush.msra.mxu2 %v5201_v5  ;;  %v1313_v15 = vadd.f32 %v1312_v14, %v1289_v50  ;;  %2902 = vmatpush.msrb.mxu1 %v2901_v0 }
 0x227   : > { %3115 = vmatpush.msra.mxu3 %v3114_v9  ;;  %3008 = vmatpush.msra.mxu0 %v2881_v42  ;;  %v2853_v42 = vsub.f32 %v5389_v40, %v5418_v8  ;;  %v3132_v58 = vand.u32 4294901760, %v3131_v11 }
 0x228   : > { %3074 = vmatpush.msra.mxu2 %v5172_v3  ;;  %v1337_v54 = vadd.f32 %v1336_v29, %v1313_v15  ;;  %2908 = vmatpush.msrb.mxu1 %v2907_v6  ;;  %v1434_v14 = vpop.f32.mrf.mxu3 }
 0x229   : > { %3121 = vmatpush.msra.mxu3 %v3120_v48  ;;  %3012 = vmatpush.msra.mxu0 %v2887_v60  ;;  %v3143_v60 = vsub.f32 %v5393_v47, %v3142_v44  ;;  %v2854_v50 = vand.u32 4294901760, %v2853_v42 }
 0x22a   : > { %3076 = vmatpush.msra.mxu2 %v5247_v27  ;;  %v1361_v4 = vadd.f32 %v1360_v49, %v1337_v54  ;;  %2914 = vmatpush.msrb.mxu1 %v2913_v39 }
 0x22b   : > { %3127 = vmatpush.msra.mxu3 %v3126_v23  ;;  %3016 = vmatpush.msra.mxu0 %v2893_v25  ;;  %v1382_v29 = vpop.f32.mrf.mxu1  ;;  %v1408_v9 = vpop.f32.mrf.mxu2 }
 0x22c   : > { %3043 = vmatpush.msra.mxu1 %v5154_v38  ;;  %3078 = vmatpush.msra.mxu2 %v5270_v45  ;;  %v5443_v57 = vadd.f32 %v1382_v29, %v1361_v4  ;;  %v1409_v49 = vadd.f32 %v1408_v9, %v5370_v31  ;;  %v1458_v25 = vpop.f32.mrf.mxu0  ;;  %v3149_v38 = vsub.f32 %v5414_v56, %v3148_v62  ;;  %v3144_v31 = vand.u32 4294901760, %v3143_v60 }
 0x22d   : > { %3133 = vmatpush.msra.mxu3 %v3132_v58  ;;  %3020 = vmatpush.msra.mxu0 %v2899_v33 }
 0x22e   : > { %3045 = vmatpush.msra.mxu1 %v5144_v32  ;;  %3080 = vmatpush.msra.mxu2 %v5291_v41  ;;  %v1435_v0 = vadd.f32 %v1434_v14, %v1409_v49  ;;  %v3150_v32 = vand.u32 4294901760, %v3149_v38 }
 0x22f   : > { %3139 = vmatpush.msra.mxu3 %v3138_v12  ;;  %2954 = vmatmul.f32.vlgmr.msrb.gmra.mxu2 %v5389_v40 }
 0x230   : > { %3024 = vmatpush.msra.mxu0 %v2905_v43  ;;  %3047 = vmatpush.msra.mxu1 %v5181_v37  ;;  %v1459_v55 = vadd.f32 %v1458_v25, %v1435_v0 }
 0x231   : > { %3082 = vmatpush.msra.mxu2 %v5325_v24  ;;  %3145 = vmatpush.msra.mxu3 %v3144_v31 }
 0x232   : > { %2855 = vmatmul.f32.vlgmr.msrb.gmra.mxu0 %v2854_v50  ;;  %2985 = vmatmul.f32.vlgmr.msrb.gmra.mxu3 %v5418_v8 }
 0x233   : > { %3028 = vmatpush.msra.mxu0 %v2911_v20  ;;  %3049 = vmatpush.msra.mxu1 %v5216_v52 }
 0x234   : > { %3084 = vmatpush.msra.mxu2 %v5356_v35  ;;  %3151 = vmatpush.msra.mxu3 %v3150_v32  ;;  %v1482_v37 = vpop.f32.mrf.mxu1 }
 0x235   : > { %2916 = vmatmul.f32.vlgmr.msrb.gmra.mxu1 %v5353_v28  ;;  %3167 = vmatpush.msrb.mxu0 %v5238_v21  ;;  %v1506_v26 = vpop.f32.mrf.mxu2  ;;  %v1483_v33 = vadd.f32 %v1482_v37, %v1459_v55 }
 0x236   : > { %3280 = vmatpush.msrb.mxu3 %v5201_v5  ;;  %3051 = vmatpush.msra.mxu1 %v5230_v53 }
 0x237   : > { %3086 = vmatpush.msra.mxu2 %v5376_v34  ;;  %3170 = vmatpush.msrb.mxu0 %v5282_v46  ;;  %v1507_v52 = vadd.f32 %v1506_v26, %v1483_v33 }
 0x238   : > { %3282 = vmatpush.msrb.mxu3 %v5172_v3  ;;  %v1528_v63 = vpop.f32.mrf.mxu3  ;;  %3053 = vmatpush.msra.mxu1 %v5262_v36 }
 0x239   : > { %3237 = vmatpush.msrb.mxu2 %v3106_v16  ;;  %3173 = vmatpush.msrb.mxu0 %v5294_v19  ;;  %v5477_v53 = vadd.f32 %v1528_v63, %v1507_v52 }
 0x23a   : > { %3284 = vmatpush.msrb.mxu3 %v5247_v27  ;;  %3055 = vmatpush.msra.mxu1 %v5268_v1 }
 0x23b   : > { %3241 = vmatpush.msrb.mxu2 %v3112_v10  ;;  %3030 = vmatmul.f32.vlgmr.msra.gmra.mxu0 %v5353_v28 }
 0x23c   : > { %3176 = vmatpush.msrb.mxu0 %v5316_v18  ;;  %3286 = vmatpush.msrb.mxu3 %v5270_v45 }
 0x23d   : > { %3245 = vmatpush.msrb.mxu2 %v3118_v30  ;;  %3057 = vmatpush.msra.mxu1 %v5305_v17 }
 0x23e   : > { %3059 = vmatmul.f32.vlgmr.msra.gmra.mxu1 %v5353_v28  ;;  %3179 = vmatpush.msrb.mxu0 %v5360_v51 }
 0x23f   : > { %3204 = vmatpush.msrb.mxu1 %v5201_v5  ;;  %3249 = vmatpush.msrb.mxu2 %v3124_v61 }
 0x240   : > { %3288 = vmatpush.msrb.mxu3 %v5291_v41  ;;  %3182 = vmatpush.msrb.mxu0 %v5374_v59 }
 0x241   : > { %3206 = vmatpush.msrb.mxu1 %v5172_v3  ;;  %3253 = vmatpush.msrb.mxu2 %v3130_v2 }
 0x242   : > { %3290 = vmatpush.msrb.mxu3 %v5325_v24  ;;  %3092 = vmatmul.f32.vlgmr.msra.gmra.mxu2 %v2854_v50 }
 0x243   : > { %3153 = vmatmul.f32.vlgmr.msra.gmra.mxu3 %v5353_v28  ;;  %3185 = vmatpush.msrb.mxu0 %v5393_v47  ;;  %v1694_v3 = vpop.f32.mrf.mxu0 }
 0x244   : > { %3208 = vmatpush.msrb.mxu1 %v5247_v27  ;;  %3257 = vmatpush.msrb.mxu2 %v3136_v22 }
 0x245   : > { %3292 = vmatpush.msrb.mxu3 %v5356_v35  ;;  %3188 = vmatpush.msrb.mxu0 %v5414_v56 }
 0x246   : > { %3210 = vmatpush.msrb.mxu1 %v5270_v45  ;;  %3261 = vmatpush.msrb.mxu2 %v3142_v44  ;;  %v1755_v5 = vpop.f32.mrf.mxu1  ;;  %v1793_v21 = vpop.f32.mrf.mxu2 }
 0x247   : > { %3294 = vmatpush.msrb.mxu3 %v5376_v34  ;;  %3191 = vmatmul.f32.vlgmr.msrb.gmra.mxu0 %v5389_v40  ;;  %v1756_v61 = vadd.f32 %v1755_v5, %v1694_v3 }
 0x248   : > { %3212 = vmatpush.msrb.mxu1 %v5291_v41  ;;  %3265 = vmatpush.msrb.mxu2 %v3148_v62 }
 0x249   : > { %v1824_v27 = vpop.f32.mrf.mxu3  ;;  %v1794_v20 = vadd.f32 %v1793_v21, %v1756_v61 }
 0x24a   : > { %3214 = vmatpush.msrb.mxu1 %v5325_v24  ;;  %3267 = vmatmul.f32.vlgmr.msrb.gmra.mxu2 %v5353_v28 }
 0x24b   : > { %3296 = vmatmul.f32.vlgmr.msrb.gmra.mxu3 %v5353_v28  ;;  %v1825_v22 = vadd.f32 %v1824_v27, %v1794_v20 }
 0x24c   : > { %3216 = vmatpush.msrb.mxu1 %v5356_v35  ;;  %v1869_v36 = vpop.f32.mrf.mxu0 }
 0x24e   : > { %3218 = vmatpush.msrb.mxu1 %v5376_v34 }
 0x24f   : > { %3222 = vmatmul.f32.vlgmr.msrb.gmra.mxu1 %v5418_v8  ;;  %v1898_v45 = vpop.f32.mrf.mxu1  ;;  %v1870_v8 = vadd.f32 %v1869_v36, %v1825_v22 }
 0x251   : > { %v1899_v39 = vadd.f32 %v1898_v45, %v1870_v8 }
 0x253   : > { %v2138_v14 = vadd.f32 %v1899_v39, %v5443_v57 }
 0x259   : > { %v1931_v1 = vpop.f32.mrf.mxu2 }
 0x25c   : > { %v1992_v46 = vpop.f32.mrf.mxu3 }
 0x25d   : > { %v1993_v58 = vadd.f32 %v1992_v46, %v1931_v1 }
 0x25f   : > { %v2030_v16 = vpop.f32.mrf.mxu0 }
 0x260   : > { %v2031_v25 = vadd.f32 %v2030_v16, %v1993_v58 }
 0x262   : > { %v2061_v41 = vpop.f32.mrf.mxu1  ;;  %v2106_v19 = vpop.f32.mrf.mxu2 }
 0x263   : > { %v2062_v38 = vadd.f32 %v2061_v41, %v2031_v25 }
 0x265   : > { %v2135_v17 = vpop.f32.mrf.mxu3  ;;  %v2107_v32 = vadd.f32 %v2106_v19, %v2062_v38 }
 0x267   : > { %v2136_v33 = vadd.f32 %v2135_v17, %v2107_v32 }
 0x269   : > { %v2139_v36 = vadd.f32 %v2136_v33, %v5477_v53 }
 0x279   : > { %v2261_v18 = vpop.f32.mrf.mxu0 }
 0x27c   : > { %v2322_v24 = vpop.f32.mrf.mxu1  ;;  %v2360_v10 = vpop.f32.mrf.mxu2 }
 0x27d   : > { %v2323_v34 = vadd.f32 %v2322_v24, %v2261_v18 }
 0x27f   : > { %v2391_v30 = vpop.f32.mrf.mxu3  ;;  %v2361_v2 = vadd.f32 %v2360_v10, %v2323_v34 }
 0x281   : > { %v2392_v48 = vadd.f32 %v2391_v30, %v2361_v2 }
 0x282   : > { %v2436_v28 = vpop.f32.mrf.mxu0 }
 0x283   : > { %v2437_v44 = vadd.f32 %v2436_v28, %v2392_v48 }
 0x285   : > { %v2465_v51 = vpop.f32.mrf.mxu1 }
 0x286   : > { %v2466_v42 = vadd.f32 %v2465_v51, %v2437_v44 }
 0x288   : > { %v2705_v29 = vadd.f32 %v2466_v42, %v2138_v14 }
 0x28f   : > { %v2498_v35 = vpop.f32.mrf.mxu2 }
 0x292   : > { %v2559_v43 = vpop.f32.mrf.mxu3 }
 0x293   : > { %v2560_v49 = vadd.f32 %v2559_v43, %v2498_v35 }
 0x295   : > { %v2597_v59 = vpop.f32.mrf.mxu0 }
 0x296   : > { %v2598_v50 = vadd.f32 %v2597_v59, %v2560_v49 }
 0x298   : > { %v2628_v40 = vpop.f32.mrf.mxu1  ;;  %v2673_v47 = vpop.f32.mrf.mxu2 }
 0x299   : > { %v2629_v0 = vadd.f32 %v2628_v40, %v2598_v50 }
 0x29b   : > { %v2702_v7 = vpop.f32.mrf.mxu3  ;;  %v2674_v57 = vadd.f32 %v2673_v47, %v2629_v0 }
 0x29d   : > { %v2703_v3 = vadd.f32 %v2702_v7, %v2674_v57 }
 0x29f   : > { %v2706_v45 = vadd.f32 %v2703_v3, %v2139_v36 }
 0x2af   : > { %v2856_v56 = vpop.f32.mrf.mxu0 }
 0x2b2   : > { %v2917_v15 = vpop.f32.mrf.mxu1  ;;  %v2955_v6 = vpop.f32.mrf.mxu2 }
 0x2b3   : > { %v2918_v11 = vadd.f32 %v2917_v15, %v2856_v56 }
 0x2b5   : > { %v2956_v23 = vadd.f32 %v2955_v6, %v2918_v11  ;;  %v2986_v54 = vpop.f32.mrf.mxu3 }
 0x2b7   : > { %v2987_v13 = vadd.f32 %v2986_v54, %v2956_v23 }
 0x2b8   : > { %v3031_v62 = vpop.f32.mrf.mxu0 }
 0x2b9   : > { %v3032_v4 = vadd.f32 %v3031_v62, %v2987_v13 }
 0x2bb   : > { %v3060_v60 = vpop.f32.mrf.mxu1 }
 0x2bc   : > { %v3061_v9 = vadd.f32 %v3060_v60, %v3032_v4 }
 0x2be   : > { %v3300_v12 = vadd.f32 %v3061_v9, %v2705_v29 }
 0x2c0   : > { %3302 = vst [vmem:[%s317_s30] sm:$0xff] %v3300_v12 }
 0x2c4   : > { %v3192_v26 = vpop.f32.mrf.mxu0 }
 0x2c5   : > { %v3093_v31 = vpop.f32.mrf.mxu2 }
 0x2c6   : > { %v3154_v55 = vpop.f32.mrf.mxu3 }
 0x2c7   : > { %v3155_v37 = vadd.f32 %v3154_v55, %v3093_v31 }
 0x2c9   : > { %v3193_v52 = vadd.f32 %v3192_v26, %v3155_v37 }
 0x2cc   : > { %v3223_v63 = vpop.f32.mrf.mxu1 }
 0x2cd   : > { %v3224_v5 = vadd.f32 %v3223_v63, %v3193_v52  ;;  %v3268_v21 = vpop.f32.mrf.mxu2 }
 0x2ce   : > { %v3297_v27 = vpop.f32.mrf.mxu3 }
 0x2cf   : > { %v3269_v1 = vadd.f32 %v3268_v21, %v3224_v5 }
 0x2d1   : > { %v3298_v46 = vadd.f32 %v3297_v27, %v3269_v1 }
 0x2d3   : > { %v3301_v16 = vadd.f32 %v3298_v46, %v2706_v45 }
 0x2d5   : > { %3303 = vst [vmem:[%s317_s30 + $0x8] sm:$0xff] %v3301_v16 }
 0x2d6   : > { %3698 = shalt.err (!%p3695_p9)
}
 0x2d7   : > { %3458 = dma.vmem_to_hbm [thread:$0]  (%p3890_p13), %s3319_s15, 256, %s3321_s16, %s3305_s28  }
 0x2d8 PF: > { %s3332_s12 = sand.u32 1, %s3733_s21   ;;  %p5597_p10 = scmp.ge.s32.totalorder %s3745_s24, 2 }
 0x2d9   : > { %s3333_s30 = scalar_lea.sflag [#allocation4], %s3332_s12 }
 0x2da   : > { %p3475_p11 = pnand %p5597_p10, %p3895_p4 }
 0x2dc   : > { %p3476_p0 = pneg %p3475_p11 }
 0x2de   : > { %3728 = dma.done.wait (%p3476_p0), %s3333_s30, 256  }
 0x2df   : > { %3730 = vsyncadd (%p3476_p0), %s3333_s30, 4294967040  ;;  %p21_p2 = scmp.ge.s32.totalorder %s3870_s27, 4   ;;  %s5598_s21 = smov %s3737_s22 }
 0x2e0   : > { %s5599_s22 = smov %s3741_s23  ;;  %s5600_s23 = smov %s3882_s9 }
 0x2e1   : > { %s5601_s24 = smov %s3870_s27  ;;  %23 = sbr.rel (!%p21_p2) target bundleno = 7 (0x7), region = 136 }
 0x2e6   :  { %3339 = vsyncpa [#allocation3], 1 }
 0x2e7   :  { %3341 = vsyncpa [#allocation3 + $0x1], 1 }
 0x2e8   :  { %3342 = vsyncpa [#allocation6], 1 }
 0x2e9   :  { %3343 = vsyncpa [#allocation9], 1 }
 0x2ea   :  { %3345 = vsyncpa [#allocation9 + $0x1], 1 }
 0x2eb   :  { %3346 = vsyncpa [#allocation4], 1 }
 0x2ec   :  { %3348 = vsyncpa [#allocation4 + $0x1], 1 }

</bundles_post_ra>
